<compile_context>
chip_gen: v7x
topology: tpu7x:2x2x1
jax: 0.10.0
libtpu: 0.0.40
codegen_flags: <defaults>
</compile_context>

<pallas_src>
import functools

import jax
import jax.numpy as jnp
from jax.experimental import pallas as pl
from jax.experimental.pallas import tpu as pltpu


def decoder_kernel(glob_ref, h0_ref, wih0_ref, whh0_ref, b0gi_ref, bhh0n_ref,
                   wcat_ref, bcat_ref, wfc_ref, bfc_ref, out_ref,
                   *, hidden_dim, num_layers, max_seq_len, feature_dim):
    """Single-invocation kernel: whole GRU unroll + fc + sigmoid in VMEM.

    glob_ref  : (B, H)            constant GRU input (same every timestep)
    h0_ref    : (L, B, H)         initial hidden state
    wih0_ref  : (H, 3H)           layer-0 input->gates weights (gate order r, z, n)
    whh0_ref  : (H, 3H)           layer-0 hidden->gates weights
    b0gi_ref  : (1, 3H)           bih0 + [bhh0_r, bhh0_z, 0]  (folded into hoisted gi0)
    bhh0n_ref : (1, H)            bhh0_n (must stay inside r * (.))
    wcat_ref  : (max(L-1,1), 2H, 4H)  fused per-layer weights for layers >= 1:
                                      [[Wih_rz, Wih_n, 0], [Whh_rz, 0, Whh_n]]
    bcat_ref  : (max(L-1,1), 1, 4H)   [bih_rz + bhh_rz, bih_n, bhh_n]
    wfc_ref   : (H, F)            fc1 weight (transposed vs. torch)
    bfc_ref   : (1, F)            fc1 bias
    out_ref   : (B, T*F)          lane-dense output slab (batch-major)
    """
    H = hidden_dim
    L = num_layers
    T = max_seq_len
    F = feature_dim
    B = glob_ref.shape[0]

    glob = glob_ref[...]                              # (B, H)

    # Hidden state carried as values (no scratch round-trips).
    h = [h0_ref[l] for l in range(L)]                 # each (B, H)

    # Hoisted weights / pre-broadcast biases (loop-invariant).
    whh0 = whh0_ref[...]                              # (H, 3H)
    wfc = wfc_ref[...]                                # (H, F)
    bfc_b = jnp.broadcast_to(bfc_ref[...], (B, F))
    bhh0n_b = jnp.broadcast_to(bhh0n_ref[...], (B, H))

    # Loop-invariant layer-0 input gates: glob @ Wih0 + bih0 (+ bhh0 for r,z columns).
    gi0 = jnp.dot(glob, wih0_ref[...],
                  preferred_element_type=jnp.float32) + b0gi_ref[...]   # (B, 3H)
    gi0_r = gi0[:, 0:H]
    gi0_z = gi0[:, H:2 * H]
    gi0_n = gi0[:, 2 * H:3 * H]

    wcat = [wcat_ref[l] for l in range(L - 1)]                          # (2H, 4H) each
    bcat_b = [jnp.broadcast_to(bcat_ref[l], (B, 4 * H)) for l in range(L - 1)]

    ys = []
    # T is static and small: full Python unroll gives the scheduler cross-step
    # visibility and static output indexing.
    for _ in range(T):
        # ---- layer 0 (input is constant; only hidden matmul per step) ----
        gh0 = jnp.dot(h[0], whh0, preferred_element_type=jnp.float32)   # (B, 3H)
        r = jax.nn.sigmoid(gi0_r + gh0[:, 0:H])
        z = jax.nn.sigmoid(gi0_z + gh0[:, H:2 * H])
        n = jnp.tanh(gi0_n + r * (gh0[:, 2 * H:3 * H] + bhh0n_b))
        h_new = (1.0 - z) * n + z * h[0]
        h[0] = h_new
        x = h_new

        # ---- layers 1..L-1: single fused matmul per layer per step ----
        for li in range(L - 1):
            h_prev = h[li + 1]
            xh = jnp.concatenate([x, h_prev], axis=-1)                  # (B, 2H)
            g = jnp.dot(xh, wcat[li],
                        preferred_element_type=jnp.float32) + bcat_b[li]  # (B, 4H)
            r = jax.nn.sigmoid(g[:, 0:H])
            z = jax.nn.sigmoid(g[:, H:2 * H])
            n = jnp.tanh(g[:, 2 * H:3 * H] + r * g[:, 3 * H:4 * H])
            h_new = (1.0 - z) * n + z * h_prev
            h[li + 1] = h_new
            x = h_new

        # ---- output projection + sigmoid ----
        y = jax.nn.sigmoid(
            jnp.dot(x, wfc, preferred_element_type=jnp.float32) + bfc_b)  # (B, F)
        ys.append(y)

    # Single lane-dense store: (B, T*F).
    out_ref[...] = jnp.concatenate(ys, axis=-1).astype(out_ref.dtype)


def _pack_weights(params, *, hidden_dim, num_layers):
    """Pre-pack GRU weights into the fused layout the kernel consumes."""
    H, L = hidden_dim, num_layers
    wih, whh = params["wih"], params["whh"]          # (L, H, 3H)
    bih, bhh = params["bih"], params["bhh"]          # (L, 1, 3H)

    wih0 = wih[0]                                    # (H, 3H)
    whh0 = whh[0]                                    # (H, 3H)
    # bhh r/z columns can be pre-summed into the hoisted input gates;
    # bhh_n must remain inside r * (.).
    b0_gi = bih[0] + jnp.concatenate(
        [bhh[0][:, :2 * H], jnp.zeros((1, H), jnp.float32)], axis=-1)   # (1, 3H)
    bhh0_n = bhh[0][:, 2 * H:]                       # (1, H)

    if L > 1:
        zeros_hh = jnp.zeros((L - 1, H, H), jnp.float32)
        top = jnp.concatenate(
            [wih[1:, :, :2 * H], wih[1:, :, 2 * H:], zeros_hh], axis=-1)  # (L-1, H, 4H)
        bot = jnp.concatenate(
            [whh[1:, :, :2 * H], zeros_hh, whh[1:, :, 2 * H:]], axis=-1)  # (L-1, H, 4H)
        wcat = jnp.concatenate([top, bot], axis=1)                        # (L-1, 2H, 4H)
        bcat = jnp.concatenate(
            [bih[1:, :, :2 * H] + bhh[1:, :, :2 * H],
             bih[1:, :, 2 * H:], bhh[1:, :, 2 * H:]], axis=-1)            # (L-1, 1, 4H)
    else:
        # Dummy (never read by the kernel when L == 1).
        wcat = jnp.zeros((1, 2 * H, 4 * H), jnp.float32)
        bcat = jnp.zeros((1, 1, 4 * H), jnp.float32)
    return wih0, whh0, b0_gi, bhh0_n, wcat, bcat


def decoder_forward(X, params, *, feature_dim, hidden_dim, num_layers,
                    max_seq_len):
    B = X.shape[0]
    H = hidden_dim
    glob = X[:, :H]
    h0 = X[:, H:].reshape(B, num_layers, H).transpose(1, 0, 2)  # (L, B, H)

    wih0, whh0, b0_gi, bhh0_n, wcat, bcat = _pack_weights(
        params, hidden_dim=H, num_layers=num_layers)

    kern = functools.partial(decoder_kernel,
                             hidden_dim=H,
                             num_layers=num_layers,
                             max_seq_len=max_seq_len,
                             feature_dim=feature_dim)
    vmem = pl.BlockSpec(memory_space=pltpu.MemorySpace.VMEM)

    out_flat = pl.pallas_call(
        kern,
        out_shape=jax.ShapeDtypeStruct((B, max_seq_len * feature_dim),
                                       jnp.float32),
        in_specs=[vmem] * 10,
        out_specs=vmem,
        compiler_params=pltpu.CompilerParams(vmem_limit_bytes=64 << 20),
    )(glob, h0, wih0, whh0, b0_gi, bhh0_n, wcat, bcat,
      params["wfc"], params["bfc"])

    # Free reshape (row-major view): (B, T*F) -> (B, T, F), batch_first like torch.
    return out_flat.reshape(B, max_seq_len, feature_dim)


def decoder_reference(X, params, *, feature_dim, hidden_dim, num_layers,
                      max_seq_len):
    """Pure-JAX reference (same math, no Pallas, unpacked weights)."""
    B = X.shape[0]
    H = hidden_dim
    glob = X[:, :H]
    h = [X[:, H:].reshape(B, num_layers, H).transpose(1, 0, 2)[l]
         for l in range(num_layers)]
    outs = []
    for _ in range(max_seq_len):
        x = glob
        for l in range(num_layers):
            gi = x @ params["wih"][l] + params["bih"][l][0]
            gh = h[l] @ params["whh"][l] + params["bhh"][l][0]
            r = jax.nn.sigmoid(gi[:, :H] + gh[:, :H])
            z = jax.nn.sigmoid(gi[:, H:2 * H] + gh[:, H:2 * H])
            n = jnp.tanh(gi[:, 2 * H:] + r * gh[:, 2 * H:])
            h[l] = (1.0 - z) * n + z * h[l]
            x = h[l]
        outs.append(jax.nn.sigmoid(x @ params["wfc"] + params["bfc"][0]))
    return jnp.stack(outs, axis=1)


def init_params(key, *, feature_dim, hidden_dim, num_layers):
    """Deterministic init matching the PyTorch module's parameter shapes."""
    H, F, L = hidden_dim, feature_dim, num_layers
    k = 1.0 / jnp.sqrt(jnp.float32(H))
    keys = jax.random.split(key, 6)

    def u(k_, shape):
        return jax.random.uniform(k_, shape, jnp.float32, -k, k)

    # torch stores weight_ih_l{k}: (3H, H); we keep the transposed (H, 3H) form.
    wih = u(keys[0], (L, H, 3 * H))
    whh = u(keys[1], (L, H, 3 * H))
    bih = u(keys[2], (L, 1, 3 * H))
    bhh = u(keys[3], (L, 1, 3 * H))
    wfc = u(keys[4], (H, F))     # torch fc1.weight is (F, H)
    bfc = u(keys[5], (1, F))
    return dict(wih=wih, whh=whh, bih=bih, bhh=bhh, wfc=wfc, bfc=bfc)


if __name__ == "__main__":
    feature_dim = 4
    hidden_dim = 32
    num_layers = 2
    max_seq_len = 8
    batch = 2

    key = jax.random.PRNGKey(0)
    pkey, xkey = jax.random.split(key)
    params = init_params(pkey,
                         feature_dim=feature_dim,
                         hidden_dim=hidden_dim,
                         num_layers=num_layers)

    # X = [glob | flattened initial hidden state], as in the PyTorch forward.
    X = jax.random.normal(
        xkey, (batch, hidden_dim + num_layers * hidden_dim), jnp.float32)

    out = decoder_forward(X, params,
                          feature_dim=feature_dim,
                          hidden_dim=hidden_dim,
                          num_layers=num_layers,
                          max_seq_len=max_seq_len)
    out = jax.block_until_ready(out)

    ref = decoder_reference(X, params,
                            feature_dim=feature_dim,
                            hidden_dim=hidden_dim,
                            num_layers=num_layers,
                            max_seq_len=max_seq_len)

    assert out.shape == (batch, max_seq_len, feature_dim)
    assert jnp.allclose(out, ref, rtol=1e-4, atol=1e-4), (
        f"max abs diff {jnp.max(jnp.abs(out - ref))}")
    print("KERNEL_OK")
</pallas_src>

<mosaic_0001>
module attributes {stable_mosaic.version = 11 : i64} {
  func.func @decoder_kernel(%arg0: memref<2x32xf32, #tpu.memory_space<vmem>>, %arg1: memref<2x2x32xf32, #tpu.memory_space<vmem>>, %arg2: memref<32x96xf32, #tpu.memory_space<vmem>>, %arg3: memref<32x96xf32, #tpu.memory_space<vmem>>, %arg4: memref<1x96xf32, #tpu.memory_space<vmem>>, %arg5: memref<1x32xf32, #tpu.memory_space<vmem>>, %arg6: memref<1x64x128xf32, #tpu.memory_space<vmem>>, %arg7: memref<1x1x128xf32, #tpu.memory_space<vmem>>, %arg8: memref<32x4xf32, #tpu.memory_space<vmem>>, %arg9: memref<1x4xf32, #tpu.memory_space<vmem>>, %arg10: memref<2x32xf32, #tpu.memory_space<vmem>>) attributes {dimension_semantics = [], scalar_prefetch = 0 : i64, scratch_operands = 0 : i64, tpu.core_type = #tpu.core_type<tc>} {
    %c0 = arith.constant 0 : index
    %c0_0 = arith.constant 0 : index
    %0 = vector.load %arg0[%c0, %c0_0] : memref<2x32xf32, #tpu.memory_space<vmem>>, vector<2x32xf32>
    %c0_1 = arith.constant 0 : index
    %c0_2 = arith.constant 0 : index
    %c0_3 = arith.constant 0 : index
    %1 = vector.load %arg1[%c0_1, %c0_2, %c0_3] : memref<2x2x32xf32, #tpu.memory_space<vmem>>, vector<1x2x32xf32>
    %2 = vector.shape_cast %1 : vector<1x2x32xf32> to vector<2x32xf32>
    %c1 = arith.constant 1 : index
    %c0_4 = arith.constant 0 : index
    %c0_5 = arith.constant 0 : index
    %3 = vector.load %arg1[%c1, %c0_4, %c0_5] : memref<2x2x32xf32, #tpu.memory_space<vmem>>, vector<1x2x32xf32>
    %4 = vector.shape_cast %3 : vector<1x2x32xf32> to vector<2x32xf32>
    %c0_6 = arith.constant 0 : index
    %c0_7 = arith.constant 0 : index
    %5 = vector.load %arg3[%c0_6, %c0_7] : memref<32x96xf32, #tpu.memory_space<vmem>>, vector<32x96xf32>
    %c0_8 = arith.constant 0 : index
    %c0_9 = arith.constant 0 : index
    %6 = vector.load %arg8[%c0_8, %c0_9] : memref<32x4xf32, #tpu.memory_space<vmem>>, vector<32x4xf32>
    %c0_10 = arith.constant 0 : index
    %c0_11 = arith.constant 0 : index
    %7 = vector.load %arg9[%c0_10, %c0_11] : memref<1x4xf32, #tpu.memory_space<vmem>>, vector<1x4xf32>
    %8 = vector.shape_cast %7 : vector<1x4xf32> to vector<1x4xf32>
    %9 = vector.broadcast %8 : vector<1x4xf32> to vector<2x4xf32>
    %c0_12 = arith.constant 0 : index
    %c0_13 = arith.constant 0 : index
    %10 = vector.load %arg5[%c0_12, %c0_13] : memref<1x32xf32, #tpu.memory_space<vmem>>, vector<1x32xf32>
    %11 = vector.shape_cast %10 : vector<1x32xf32> to vector<1x32xf32>
    %12 = vector.broadcast %11 : vector<1x32xf32> to vector<2x32xf32>
    %c0_14 = arith.constant 0 : index
    %c0_15 = arith.constant 0 : index
    %13 = vector.load %arg2[%c0_14, %c0_15] : memref<32x96xf32, #tpu.memory_space<vmem>>, vector<32x96xf32>
    %cst = arith.constant dense<0.000000e+00> : vector<2x96xf32>
    %14 = tpu.matmul %0, %13, %cst {dimension_numbers = #tpu.dot_dimension_numbers<[1], [0], [0], [1], [0, 0, 1, 1], [], []>} : vector<2x32xf32>, vector<32x96xf32>, vector<2x96xf32> -> vector<2x96xf32>
    %c0_16 = arith.constant 0 : index
    %c0_17 = arith.constant 0 : index
    %15 = vector.load %arg4[%c0_16, %c0_17] : memref<1x96xf32, #tpu.memory_space<vmem>>, vector<1x96xf32>
    %16 = vector.broadcast %15 : vector<1x96xf32> to vector<2x96xf32>
    %17 = arith.addf %14, %16 : vector<2x96xf32>
    %18 = vector.extract_strided_slice %17 {offsets = [0, 0], sizes = [2, 32], strides = [1, 1]} : vector<2x96xf32> to vector<2x32xf32>
    %19 = vector.extract_strided_slice %17 {offsets = [0, 32], sizes = [2, 32], strides = [1, 1]} : vector<2x96xf32> to vector<2x32xf32>
    %20 = vector.extract_strided_slice %17 {offsets = [0, 64], sizes = [2, 32], strides = [1, 1]} : vector<2x96xf32> to vector<2x32xf32>
    %c0_18 = arith.constant 0 : index
    %c0_19 = arith.constant 0 : index
    %c0_20 = arith.constant 0 : index
    %21 = vector.load %arg6[%c0_18, %c0_19, %c0_20] : memref<1x64x128xf32, #tpu.memory_space<vmem>>, vector<1x64x128xf32>
    %22 = vector.shape_cast %21 : vector<1x64x128xf32> to vector<64x128xf32>
    %c0_21 = arith.constant 0 : index
    %c0_22 = arith.constant 0 : index
    %c0_23 = arith.constant 0 : index
    %23 = vector.load %arg7[%c0_21, %c0_22, %c0_23] : memref<1x1x128xf32, #tpu.memory_space<vmem>>, vector<1x1x128xf32>
    %24 = vector.shape_cast %23 : vector<1x1x128xf32> to vector<1x128xf32>
    %25 = vector.shape_cast %24 : vector<1x128xf32> to vector<1x128xf32>
    %26 = vector.broadcast %25 : vector<1x128xf32> to vector<2x128xf32>
    %cst_24 = arith.constant dense<0.000000e+00> : vector<2x96xf32>
    %27 = tpu.matmul %2, %5, %cst_24 {dimension_numbers = #tpu.dot_dimension_numbers<[1], [0], [0], [1], [0, 0, 1, 1], [], []>} : vector<2x32xf32>, vector<32x96xf32>, vector<2x96xf32> -> vector<2x96xf32>
    %28 = vector.extract_strided_slice %27 {offsets = [0, 0], sizes = [2, 32], strides = [1, 1]} : vector<2x96xf32> to vector<2x32xf32>
    %29 = arith.addf %18, %28 : vector<2x32xf32>
    %30 = arith.negf %29 : vector<2x32xf32>
    %31 = math.exp %30 : vector<2x32xf32>
    %cst_25 = arith.constant 1.000000e+00 : f32
    %32 = vector.broadcast %cst_25 : f32 to vector<2x32xf32>
    %33 = arith.addf %32, %31 : vector<2x32xf32>
    %34 = arith.divf %32, %33 : vector<2x32xf32>
    %35 = vector.extract_strided_slice %27 {offsets = [0, 32], sizes = [2, 32], strides = [1, 1]} : vector<2x96xf32> to vector<2x32xf32>
    %36 = arith.addf %19, %35 : vector<2x32xf32>
    %37 = arith.negf %36 : vector<2x32xf32>
    %38 = math.exp %37 : vector<2x32xf32>
    %cst_26 = arith.constant 1.000000e+00 : f32
    %39 = vector.broadcast %cst_26 : f32 to vector<2x32xf32>
    %40 = arith.addf %39, %38 : vector<2x32xf32>
    %41 = arith.divf %39, %40 : vector<2x32xf32>
    %42 = vector.extract_strided_slice %27 {offsets = [0, 64], sizes = [2, 32], strides = [1, 1]} : vector<2x96xf32> to vector<2x32xf32>
    %43 = arith.addf %42, %12 : vector<2x32xf32>
    %44 = arith.mulf %34, %43 : vector<2x32xf32>
    %45 = arith.addf %20, %44 : vector<2x32xf32>
    %46 = math.tanh %45 : vector<2x32xf32>
    %cst_27 = arith.constant 1.000000e+00 : f32
    %47 = vector.broadcast %cst_27 : f32 to vector<2x32xf32>
    %48 = arith.subf %47, %41 : vector<2x32xf32>
    %49 = arith.mulf %48, %46 : vector<2x32xf32>
    %50 = arith.mulf %41, %2 : vector<2x32xf32>
    %51 = arith.addf %49, %50 : vector<2x32xf32>
    %52 = tpu.concatenate %51, %4 in 1 : vector<2x32xf32>, vector<2x32xf32> -> vector<2x64xf32>
    %cst_28 = arith.constant dense<0.000000e+00> : vector<2x128xf32>
    %53 = tpu.matmul %52, %22, %cst_28 {dimension_numbers = #tpu.dot_dimension_numbers<[1], [0], [0], [1], [0, 0, 1, 1], [], []>} : vector<2x64xf32>, vector<64x128xf32>, vector<2x128xf32> -> vector<2x128xf32>
    %54 = arith.addf %53, %26 : vector<2x128xf32>
    %55 = vector.extract_strided_slice %54 {offsets = [0, 0], sizes = [2, 32], strides = [1, 1]} : vector<2x128xf32> to vector<2x32xf32>
    %56 = arith.negf %55 : vector<2x32xf32>
    %57 = math.exp %56 : vector<2x32xf32>
    %cst_29 = arith.constant 1.000000e+00 : f32
    %58 = vector.broadcast %cst_29 : f32 to vector<2x32xf32>
    %59 = arith.addf %58, %57 : vector<2x32xf32>
    %60 = arith.divf %58, %59 : vector<2x32xf32>
    %61 = vector.extract_strided_slice %54 {offsets = [0, 32], sizes = [2, 32], strides = [1, 1]} : vector<2x128xf32> to vector<2x32xf32>
    %62 = arith.negf %61 : vector<2x32xf32>
    %63 = math.exp %62 : vector<2x32xf32>
    %cst_30 = arith.constant 1.000000e+00 : f32
    %64 = vector.broadcast %cst_30 : f32 to vector<2x32xf32>
    %65 = arith.addf %64, %63 : vector<2x32xf32>
    %66 = arith.divf %64, %65 : vector<2x32xf32>
    %67 = vector.extract_strided_slice %54 {offsets = [0, 64], sizes = [2, 32], strides = [1, 1]} : vector<2x128xf32> to vector<2x32xf32>
    %68 = vector.extract_strided_slice %54 {offsets = [0, 96], sizes = [2, 32], strides = [1, 1]} : vector<2x128xf32> to vector<2x32xf32>
    %69 = arith.mulf %60, %68 : vector<2x32xf32>
    %70 = arith.addf %67, %69 : vector<2x32xf32>
    %71 = math.tanh %70 : vector<2x32xf32>
    %cst_31 = arith.constant 1.000000e+00 : f32
    %72 = vector.broadcast %cst_31 : f32 to vector<2x32xf32>
    %73 = arith.subf %72, %66 : vector<2x32xf32>
    %74 = arith.mulf %73, %71 : vector<2x32xf32>
    %75 = arith.mulf %66, %4 : vector<2x32xf32>
    %76 = arith.addf %74, %75 : vector<2x32xf32>
    %cst_32 = arith.constant dense<0.000000e+00> : vector<2x4xf32>
    %77 = tpu.matmul %76, %6, %cst_32 {dimension_numbers = #tpu.dot_dimension_numbers<[1], [0], [0], [1], [0, 0, 1, 1], [], []>} : vector<2x32xf32>, vector<32x4xf32>, vector<2x4xf32> -> vector<2x4xf32>
    %78 = arith.addf %77, %9 : vector<2x4xf32>
    %79 = arith.negf %78 : vector<2x4xf32>
    %80 = math.exp %79 : vector<2x4xf32>
    %cst_33 = arith.constant 1.000000e+00 : f32
    %81 = vector.broadcast %cst_33 : f32 to vector<2x4xf32>
    %82 = arith.addf %81, %80 : vector<2x4xf32>
    %83 = arith.divf %81, %82 : vector<2x4xf32>
    %cst_34 = arith.constant dense<0.000000e+00> : vector<2x96xf32>
    %84 = tpu.matmul %51, %5, %cst_34 {dimension_numbers = #tpu.dot_dimension_numbers<[1], [0], [0], [1], [0, 0, 1, 1], [], []>} : vector<2x32xf32>, vector<32x96xf32>, vector<2x96xf32> -> vector<2x96xf32>
    %85 = vector.extract_strided_slice %84 {offsets = [0, 0], sizes = [2, 32], strides = [1, 1]} : vector<2x96xf32> to vector<2x32xf32>
    %86 = arith.addf %18, %85 : vector<2x32xf32>
    %87 = arith.negf %86 : vector<2x32xf32>
    %88 = math.exp %87 : vector<2x32xf32>
    %cst_35 = arith.constant 1.000000e+00 : f32
    %89 = vector.broadcast %cst_35 : f32 to vector<2x32xf32>
    %90 = arith.addf %89, %88 : vector<2x32xf32>
    %91 = arith.divf %89, %90 : vector<2x32xf32>
    %92 = vector.extract_strided_slice %84 {offsets = [0, 32], sizes = [2, 32], strides = [1, 1]} : vector<2x96xf32> to vector<2x32xf32>
    %93 = arith.addf %19, %92 : vector<2x32xf32>
    %94 = arith.negf %93 : vector<2x32xf32>
    %95 = math.exp %94 : vector<2x32xf32>
    %cst_36 = arith.constant 1.000000e+00 : f32
    %96 = vector.broadcast %cst_36 : f32 to vector<2x32xf32>
    %97 = arith.addf %96, %95 : vector<2x32xf32>
    %98 = arith.divf %96, %97 : vector<2x32xf32>
    %99 = vector.extract_strided_slice %84 {offsets = [0, 64], sizes = [2, 32], strides = [1, 1]} : vector<2x96xf32> to vector<2x32xf32>
    %100 = arith.addf %99, %12 : vector<2x32xf32>
    %101 = arith.mulf %91, %100 : vector<2x32xf32>
    %102 = arith.addf %20, %101 : vector<2x32xf32>
    %103 = math.tanh %102 : vector<2x32xf32>
    %cst_37 = arith.constant 1.000000e+00 : f32
    %104 = vector.broadcast %cst_37 : f32 to vector<2x32xf32>
    %105 = arith.subf %104, %98 : vector<2x32xf32>
    %106 = arith.mulf %105, %103 : vector<2x32xf32>
    %107 = arith.mulf %98, %51 : vector<2x32xf32>
    %108 = arith.addf %106, %107 : vector<2x32xf32>
    %109 = tpu.concatenate %108, %76 in 1 : vector<2x32xf32>, vector<2x32xf32> -> vector<2x64xf32>
    %cst_38 = arith.constant dense<0.000000e+00> : vector<2x128xf32>
    %110 = tpu.matmul %109, %22, %cst_38 {dimension_numbers = #tpu.dot_dimension_numbers<[1], [0], [0], [1], [0, 0, 1, 1], [], []>} : vector<2x64xf32>, vector<64x128xf32>, vector<2x128xf32> -> vector<2x128xf32>
    %111 = arith.addf %110, %26 : vector<2x128xf32>
    %112 = vector.extract_strided_slice %111 {offsets = [0, 0], sizes = [2, 32], strides = [1, 1]} : vector<2x128xf32> to vector<2x32xf32>
    %113 = arith.negf %112 : vector<2x32xf32>
    %114 = math.exp %113 : vector<2x32xf32>
    %cst_39 = arith.constant 1.000000e+00 : f32
    %115 = vector.broadcast %cst_39 : f32 to vector<2x32xf32>
    %116 = arith.addf %115, %114 : vector<2x32xf32>
    %117 = arith.divf %115, %116 : vector<2x32xf32>
    %118 = vector.extract_strided_slice %111 {offsets = [0, 32], sizes = [2, 32], strides = [1, 1]} : vector<2x128xf32> to vector<2x32xf32>
    %119 = arith.negf %118 : vector<2x32xf32>
    %120 = math.exp %119 : vector<2x32xf32>
    %cst_40 = arith.constant 1.000000e+00 : f32
    %121 = vector.broadcast %cst_40 : f32 to vector<2x32xf32>
    %122 = arith.addf %121, %120 : vector<2x32xf32>
    %123 = arith.divf %121, %122 : vector<2x32xf32>
    %124 = vector.extract_strided_slice %111 {offsets = [0, 64], sizes = [2, 32], strides = [1, 1]} : vector<2x128xf32> to vector<2x32xf32>
    %125 = vector.extract_strided_slice %111 {offsets = [0, 96], sizes = [2, 32], strides = [1, 1]} : vector<2x128xf32> to vector<2x32xf32>
    %126 = arith.mulf %117, %125 : vector<2x32xf32>
    %127 = arith.addf %124, %126 : vector<2x32xf32>
    %128 = math.tanh %127 : vector<2x32xf32>
    %cst_41 = arith.constant 1.000000e+00 : f32
    %129 = vector.broadcast %cst_41 : f32 to vector<2x32xf32>
    %130 = arith.subf %129, %123 : vector<2x32xf32>
    %131 = arith.mulf %130, %128 : vector<2x32xf32>
    %132 = arith.mulf %123, %76 : vector<2x32xf32>
    %133 = arith.addf %131, %132 : vector<2x32xf32>
    %cst_42 = arith.constant dense<0.000000e+00> : vector<2x4xf32>
    %134 = tpu.matmul %133, %6, %cst_42 {dimension_numbers = #tpu.dot_dimension_numbers<[1], [0], [0], [1], [0, 0, 1, 1], [], []>} : vector<2x32xf32>, vector<32x4xf32>, vector<2x4xf32> -> vector<2x4xf32>
    %135 = arith.addf %134, %9 : vector<2x4xf32>
    %136 = arith.negf %135 : vector<2x4xf32>
    %137 = math.exp %136 : vector<2x4xf32>
    %cst_43 = arith.constant 1.000000e+00 : f32
    %138 = vector.broadcast %cst_43 : f32 to vector<2x4xf32>
    %139 = arith.addf %138, %137 : vector<2x4xf32>
    %140 = arith.divf %138, %139 : vector<2x4xf32>
    %cst_44 = arith.constant dense<0.000000e+00> : vector<2x96xf32>
    %141 = tpu.matmul %108, %5, %cst_44 {dimension_numbers = #tpu.dot_dimension_numbers<[1], [0], [0], [1], [0, 0, 1, 1], [], []>} : vector<2x32xf32>, vector<32x96xf32>, vector<2x96xf32> -> vector<2x96xf32>
    %142 = vector.extract_strided_slice %141 {offsets = [0, 0], sizes = [2, 32], strides = [1, 1]} : vector<2x96xf32> to vector<2x32xf32>
    %143 = arith.addf %18, %142 : vector<2x32xf32>
    %144 = arith.negf %143 : vector<2x32xf32>
    %145 = math.exp %144 : vector<2x32xf32>
    %cst_45 = arith.constant 1.000000e+00 : f32
    %146 = vector.broadcast %cst_45 : f32 to vector<2x32xf32>
    %147 = arith.addf %146, %145 : vector<2x32xf32>
    %148 = arith.divf %146, %147 : vector<2x32xf32>
    %149 = vector.extract_strided_slice %141 {offsets = [0, 32], sizes = [2, 32], strides = [1, 1]} : vector<2x96xf32> to vector<2x32xf32>
    %150 = arith.addf %19, %149 : vector<2x32xf32>
    %151 = arith.negf %150 : vector<2x32xf32>
    %152 = math.exp %151 : vector<2x32xf32>
    %cst_46 = arith.constant 1.000000e+00 : f32
    %153 = vector.broadcast %cst_46 : f32 to vector<2x32xf32>
    %154 = arith.addf %153, %152 : vector<2x32xf32>
    %155 = arith.divf %153, %154 : vector<2x32xf32>
    %156 = vector.extract_strided_slice %141 {offsets = [0, 64], sizes = [2, 32], strides = [1, 1]} : vector<2x96xf32> to vector<2x32xf32>
    %157 = arith.addf %156, %12 : vector<2x32xf32>
    %158 = arith.mulf %148, %157 : vector<2x32xf32>
    %159 = arith.addf %20, %158 : vector<2x32xf32>
    %160 = math.tanh %159 : vector<2x32xf32>
    %cst_47 = arith.constant 1.000000e+00 : f32
    %161 = vector.broadcast %cst_47 : f32 to vector<2x32xf32>
    %162 = arith.subf %161, %155 : vector<2x32xf32>
    %163 = arith.mulf %162, %160 : vector<2x32xf32>
    %164 = arith.mulf %155, %108 : vector<2x32xf32>
    %165 = arith.addf %163, %164 : vector<2x32xf32>
    %166 = tpu.concatenate %165, %133 in 1 : vector<2x32xf32>, vector<2x32xf32> -> vector<2x64xf32>
    %cst_48 = arith.constant dense<0.000000e+00> : vector<2x128xf32>
    %167 = tpu.matmul %166, %22, %cst_48 {dimension_numbers = #tpu.dot_dimension_numbers<[1], [0], [0], [1], [0, 0, 1, 1], [], []>} : vector<2x64xf32>, vector<64x128xf32>, vector<2x128xf32> -> vector<2x128xf32>
    %168 = arith.addf %167, %26 : vector<2x128xf32>
    %169 = vector.extract_strided_slice %168 {offsets = [0, 0], sizes = [2, 32], strides = [1, 1]} : vector<2x128xf32> to vector<2x32xf32>
    %170 = arith.negf %169 : vector<2x32xf32>
    %171 = math.exp %170 : vector<2x32xf32>
    %cst_49 = arith.constant 1.000000e+00 : f32
    %172 = vector.broadcast %cst_49 : f32 to vector<2x32xf32>
    %173 = arith.addf %172, %171 : vector<2x32xf32>
    %174 = arith.divf %172, %173 : vector<2x32xf32>
    %175 = vector.extract_strided_slice %168 {offsets = [0, 32], sizes = [2, 32], strides = [1, 1]} : vector<2x128xf32> to vector<2x32xf32>
    %176 = arith.negf %175 : vector<2x32xf32>
    %177 = math.exp %176 : vector<2x32xf32>
    %cst_50 = arith.constant 1.000000e+00 : f32
    %178 = vector.broadcast %cst_50 : f32 to vector<2x32xf32>
    %179 = arith.addf %178, %177 : vector<2x32xf32>
    %180 = arith.divf %178, %179 : vector<2x32xf32>
    %181 = vector.extract_strided_slice %168 {offsets = [0, 64], sizes = [2, 32], strides = [1, 1]} : vector<2x128xf32> to vector<2x32xf32>
    %182 = vector.extract_strided_slice %168 {offsets = [0, 96], sizes = [2, 32], strides = [1, 1]} : vector<2x128xf32> to vector<2x32xf32>
    %183 = arith.mulf %174, %182 : vector<2x32xf32>
    %184 = arith.addf %181, %183 : vector<2x32xf32>
    %185 = math.tanh %184 : vector<2x32xf32>
    %cst_51 = arith.constant 1.000000e+00 : f32
    %186 = vector.broadcast %cst_51 : f32 to vector<2x32xf32>
    %187 = arith.subf %186, %180 : vector<2x32xf32>
    %188 = arith.mulf %187, %185 : vector<2x32xf32>
    %189 = arith.mulf %180, %133 : vector<2x32xf32>
    %190 = arith.addf %188, %189 : vector<2x32xf32>
    %cst_52 = arith.constant dense<0.000000e+00> : vector<2x4xf32>
    %191 = tpu.matmul %190, %6, %cst_52 {dimension_numbers = #tpu.dot_dimension_numbers<[1], [0], [0], [1], [0, 0, 1, 1], [], []>} : vector<2x32xf32>, vector<32x4xf32>, vector<2x4xf32> -> vector<2x4xf32>
    %192 = arith.addf %191, %9 : vector<2x4xf32>
    %193 = arith.negf %192 : vector<2x4xf32>
    %194 = math.exp %193 : vector<2x4xf32>
    %cst_53 = arith.constant 1.000000e+00 : f32
    %195 = vector.broadcast %cst_53 : f32 to vector<2x4xf32>
    %196 = arith.addf %195, %194 : vector<2x4xf32>
    %197 = arith.divf %195, %196 : vector<2x4xf32>
    %cst_54 = arith.constant dense<0.000000e+00> : vector<2x96xf32>
    %198 = tpu.matmul %165, %5, %cst_54 {dimension_numbers = #tpu.dot_dimension_numbers<[1], [0], [0], [1], [0, 0, 1, 1], [], []>} : vector<2x32xf32>, vector<32x96xf32>, vector<2x96xf32> -> vector<2x96xf32>
    %199 = vector.extract_strided_slice %198 {offsets = [0, 0], sizes = [2, 32], strides = [1, 1]} : vector<2x96xf32> to vector<2x32xf32>
    %200 = arith.addf %18, %199 : vector<2x32xf32>
    %201 = arith.negf %200 : vector<2x32xf32>
    %202 = math.exp %201 : vector<2x32xf32>
    %cst_55 = arith.constant 1.000000e+00 : f32
    %203 = vector.broadcast %cst_55 : f32 to vector<2x32xf32>
    %204 = arith.addf %203, %202 : vector<2x32xf32>
    %205 = arith.divf %203, %204 : vector<2x32xf32>
    %206 = vector.extract_strided_slice %198 {offsets = [0, 32], sizes = [2, 32], strides = [1, 1]} : vector<2x96xf32> to vector<2x32xf32>
    %207 = arith.addf %19, %206 : vector<2x32xf32>
    %208 = arith.negf %207 : vector<2x32xf32>
    %209 = math.exp %208 : vector<2x32xf32>
    %cst_56 = arith.constant 1.000000e+00 : f32
    %210 = vector.broadcast %cst_56 : f32 to vector<2x32xf32>
    %211 = arith.addf %210, %209 : vector<2x32xf32>
    %212 = arith.divf %210, %211 : vector<2x32xf32>
    %213 = vector.extract_strided_slice %198 {offsets = [0, 64], sizes = [2, 32], strides = [1, 1]} : vector<2x96xf32> to vector<2x32xf32>
    %214 = arith.addf %213, %12 : vector<2x32xf32>
    %215 = arith.mulf %205, %214 : vector<2x32xf32>
    %216 = arith.addf %20, %215 : vector<2x32xf32>
    %217 = math.tanh %216 : vector<2x32xf32>
    %cst_57 = arith.constant 1.000000e+00 : f32
    %218 = vector.broadcast %cst_57 : f32 to vector<2x32xf32>
    %219 = arith.subf %218, %212 : vector<2x32xf32>
    %220 = arith.mulf %219, %217 : vector<2x32xf32>
    %221 = arith.mulf %212, %165 : vector<2x32xf32>
    %222 = arith.addf %220, %221 : vector<2x32xf32>
    %223 = tpu.concatenate %222, %190 in 1 : vector<2x32xf32>, vector<2x32xf32> -> vector<2x64xf32>
    %cst_58 = arith.constant dense<0.000000e+00> : vector<2x128xf32>
    %224 = tpu.matmul %223, %22, %cst_58 {dimension_numbers = #tpu.dot_dimension_numbers<[1], [0], [0], [1], [0, 0, 1, 1], [], []>} : vector<2x64xf32>, vector<64x128xf32>, vector<2x128xf32> -> vector<2x128xf32>
    %225 = arith.addf %224, %26 : vector<2x128xf32>
    %226 = vector.extract_strided_slice %225 {offsets = [0, 0], sizes = [2, 32], strides = [1, 1]} : vector<2x128xf32> to vector<2x32xf32>
    %227 = arith.negf %226 : vector<2x32xf32>
    %228 = math.exp %227 : vector<2x32xf32>
    %cst_59 = arith.constant 1.000000e+00 : f32
    %229 = vector.broadcast %cst_59 : f32 to vector<2x32xf32>
    %230 = arith.addf %229, %228 : vector<2x32xf32>
    %231 = arith.divf %229, %230 : vector<2x32xf32>
    %232 = vector.extract_strided_slice %225 {offsets = [0, 32], sizes = [2, 32], strides = [1, 1]} : vector<2x128xf32> to vector<2x32xf32>
    %233 = arith.negf %232 : vector<2x32xf32>
    %234 = math.exp %233 : vector<2x32xf32>
    %cst_60 = arith.constant 1.000000e+00 : f32
    %235 = vector.broadcast %cst_60 : f32 to vector<2x32xf32>
    %236 = arith.addf %235, %234 : vector<2x32xf32>
    %237 = arith.divf %235, %236 : vector<2x32xf32>
    %238 = vector.extract_strided_slice %225 {offsets = [0, 64], sizes = [2, 32], strides = [1, 1]} : vector<2x128xf32> to vector<2x32xf32>
    %239 = vector.extract_strided_slice %225 {offsets = [0, 96], sizes = [2, 32], strides = [1, 1]} : vector<2x128xf32> to vector<2x32xf32>
    %240 = arith.mulf %231, %239 : vector<2x32xf32>
    %241 = arith.addf %238, %240 : vector<2x32xf32>
    %242 = math.tanh %241 : vector<2x32xf32>
    %cst_61 = arith.constant 1.000000e+00 : f32
    %243 = vector.broadcast %cst_61 : f32 to vector<2x32xf32>
    %244 = arith.subf %243, %237 : vector<2x32xf32>
    %245 = arith.mulf %244, %242 : vector<2x32xf32>
    %246 = arith.mulf %237, %190 : vector<2x32xf32>
    %247 = arith.addf %245, %246 : vector<2x32xf32>
    %cst_62 = arith.constant dense<0.000000e+00> : vector<2x4xf32>
    %248 = tpu.matmul %247, %6, %cst_62 {dimension_numbers = #tpu.dot_dimension_numbers<[1], [0], [0], [1], [0, 0, 1, 1], [], []>} : vector<2x32xf32>, vector<32x4xf32>, vector<2x4xf32> -> vector<2x4xf32>
    %249 = arith.addf %248, %9 : vector<2x4xf32>
    %250 = arith.negf %249 : vector<2x4xf32>
    %251 = math.exp %250 : vector<2x4xf32>
    %cst_63 = arith.constant 1.000000e+00 : f32
    %252 = vector.broadcast %cst_63 : f32 to vector<2x4xf32>
    %253 = arith.addf %252, %251 : vector<2x4xf32>
    %254 = arith.divf %252, %253 : vector<2x4xf32>
    %cst_64 = arith.constant dense<0.000000e+00> : vector<2x96xf32>
    %255 = tpu.matmul %222, %5, %cst_64 {dimension_numbers = #tpu.dot_dimension_numbers<[1], [0], [0], [1], [0, 0, 1, 1], [], []>} : vector<2x32xf32>, vector<32x96xf32>, vector<2x96xf32> -> vector<2x96xf32>
    %256 = vector.extract_strided_slice %255 {offsets = [0, 0], sizes = [2, 32], strides = [1, 1]} : vector<2x96xf32> to vector<2x32xf32>
    %257 = arith.addf %18, %256 : vector<2x32xf32>
    %258 = arith.negf %257 : vector<2x32xf32>
    %259 = math.exp %258 : vector<2x32xf32>
    %cst_65 = arith.constant 1.000000e+00 : f32
    %260 = vector.broadcast %cst_65 : f32 to vector<2x32xf32>
    %261 = arith.addf %260, %259 : vector<2x32xf32>
    %262 = arith.divf %260, %261 : vector<2x32xf32>
    %263 = vector.extract_strided_slice %255 {offsets = [0, 32], sizes = [2, 32], strides = [1, 1]} : vector<2x96xf32> to vector<2x32xf32>
    %264 = arith.addf %19, %263 : vector<2x32xf32>
    %265 = arith.negf %264 : vector<2x32xf32>
    %266 = math.exp %265 : vector<2x32xf32>
    %cst_66 = arith.constant 1.000000e+00 : f32
    %267 = vector.broadcast %cst_66 : f32 to vector<2x32xf32>
    %268 = arith.addf %267, %266 : vector<2x32xf32>
    %269 = arith.divf %267, %268 : vector<2x32xf32>
    %270 = vector.extract_strided_slice %255 {offsets = [0, 64], sizes = [2, 32], strides = [1, 1]} : vector<2x96xf32> to vector<2x32xf32>
    %271 = arith.addf %270, %12 : vector<2x32xf32>
    %272 = arith.mulf %262, %271 : vector<2x32xf32>
    %273 = arith.addf %20, %272 : vector<2x32xf32>
    %274 = math.tanh %273 : vector<2x32xf32>
    %cst_67 = arith.constant 1.000000e+00 : f32
    %275 = vector.broadcast %cst_67 : f32 to vector<2x32xf32>
    %276 = arith.subf %275, %269 : vector<2x32xf32>
    %277 = arith.mulf %276, %274 : vector<2x32xf32>
    %278 = arith.mulf %269, %222 : vector<2x32xf32>
    %279 = arith.addf %277, %278 : vector<2x32xf32>
    %280 = tpu.concatenate %279, %247 in 1 : vector<2x32xf32>, vector<2x32xf32> -> vector<2x64xf32>
    %cst_68 = arith.constant dense<0.000000e+00> : vector<2x128xf32>
    %281 = tpu.matmul %280, %22, %cst_68 {dimension_numbers = #tpu.dot_dimension_numbers<[1], [0], [0], [1], [0, 0, 1, 1], [], []>} : vector<2x64xf32>, vector<64x128xf32>, vector<2x128xf32> -> vector<2x128xf32>
    %282 = arith.addf %281, %26 : vector<2x128xf32>
    %283 = vector.extract_strided_slice %282 {offsets = [0, 0], sizes = [2, 32], strides = [1, 1]} : vector<2x128xf32> to vector<2x32xf32>
    %284 = arith.negf %283 : vector<2x32xf32>
    %285 = math.exp %284 : vector<2x32xf32>
    %cst_69 = arith.constant 1.000000e+00 : f32
    %286 = vector.broadcast %cst_69 : f32 to vector<2x32xf32>
    %287 = arith.addf %286, %285 : vector<2x32xf32>
    %288 = arith.divf %286, %287 : vector<2x32xf32>
    %289 = vector.extract_strided_slice %282 {offsets = [0, 32], sizes = [2, 32], strides = [1, 1]} : vector<2x128xf32> to vector<2x32xf32>
    %290 = arith.negf %289 : vector<2x32xf32>
    %291 = math.exp %290 : vector<2x32xf32>
    %cst_70 = arith.constant 1.000000e+00 : f32
    %292 = vector.broadcast %cst_70 : f32 to vector<2x32xf32>
    %293 = arith.addf %292, %291 : vector<2x32xf32>
    %294 = arith.divf %292, %293 : vector<2x32xf32>
    %295 = vector.extract_strided_slice %282 {offsets = [0, 64], sizes = [2, 32], strides = [1, 1]} : vector<2x128xf32> to vector<2x32xf32>
    %296 = vector.extract_strided_slice %282 {offsets = [0, 96], sizes = [2, 32], strides = [1, 1]} : vector<2x128xf32> to vector<2x32xf32>
    %297 = arith.mulf %288, %296 : vector<2x32xf32>
    %298 = arith.addf %295, %297 : vector<2x32xf32>
    %299 = math.tanh %298 : vector<2x32xf32>
    %cst_71 = arith.constant 1.000000e+00 : f32
    %300 = vector.broadcast %cst_71 : f32 to vector<2x32xf32>
    %301 = arith.subf %300, %294 : vector<2x32xf32>
    %302 = arith.mulf %301, %299 : vector<2x32xf32>
    %303 = arith.mulf %294, %247 : vector<2x32xf32>
    %304 = arith.addf %302, %303 : vector<2x32xf32>
    %cst_72 = arith.constant dense<0.000000e+00> : vector<2x4xf32>
    %305 = tpu.matmul %304, %6, %cst_72 {dimension_numbers = #tpu.dot_dimension_numbers<[1], [0], [0], [1], [0, 0, 1, 1], [], []>} : vector<2x32xf32>, vector<32x4xf32>, vector<2x4xf32> -> vector<2x4xf32>
    %306 = arith.addf %305, %9 : vector<2x4xf32>
    %307 = arith.negf %306 : vector<2x4xf32>
    %308 = math.exp %307 : vector<2x4xf32>
    %cst_73 = arith.constant 1.000000e+00 : f32
    %309 = vector.broadcast %cst_73 : f32 to vector<2x4xf32>
    %310 = arith.addf %309, %308 : vector<2x4xf32>
    %311 = arith.divf %309, %310 : vector<2x4xf32>
    %cst_74 = arith.constant dense<0.000000e+00> : vector<2x96xf32>
    %312 = tpu.matmul %279, %5, %cst_74 {dimension_numbers = #tpu.dot_dimension_numbers<[1], [0], [0], [1], [0, 0, 1, 1], [], []>} : vector<2x32xf32>, vector<32x96xf32>, vector<2x96xf32> -> vector<2x96xf32>
    %313 = vector.extract_strided_slice %312 {offsets = [0, 0], sizes = [2, 32], strides = [1, 1]} : vector<2x96xf32> to vector<2x32xf32>
    %314 = arith.addf %18, %313 : vector<2x32xf32>
    %315 = arith.negf %314 : vector<2x32xf32>
    %316 = math.exp %315 : vector<2x32xf32>
    %cst_75 = arith.constant 1.000000e+00 : f32
    %317 = vector.broadcast %cst_75 : f32 to vector<2x32xf32>
    %318 = arith.addf %317, %316 : vector<2x32xf32>
    %319 = arith.divf %317, %318 : vector<2x32xf32>
    %320 = vector.extract_strided_slice %312 {offsets = [0, 32], sizes = [2, 32], strides = [1, 1]} : vector<2x96xf32> to vector<2x32xf32>
    %321 = arith.addf %19, %320 : vector<2x32xf32>
    %322 = arith.negf %321 : vector<2x32xf32>
    %323 = math.exp %322 : vector<2x32xf32>
    %cst_76 = arith.constant 1.000000e+00 : f32
    %324 = vector.broadcast %cst_76 : f32 to vector<2x32xf32>
    %325 = arith.addf %324, %323 : vector<2x32xf32>
    %326 = arith.divf %324, %325 : vector<2x32xf32>
    %327 = vector.extract_strided_slice %312 {offsets = [0, 64], sizes = [2, 32], strides = [1, 1]} : vector<2x96xf32> to vector<2x32xf32>
    %328 = arith.addf %327, %12 : vector<2x32xf32>
    %329 = arith.mulf %319, %328 : vector<2x32xf32>
    %330 = arith.addf %20, %329 : vector<2x32xf32>
    %331 = math.tanh %330 : vector<2x32xf32>
    %cst_77 = arith.constant 1.000000e+00 : f32
    %332 = vector.broadcast %cst_77 : f32 to vector<2x32xf32>
    %333 = arith.subf %332, %326 : vector<2x32xf32>
    %334 = arith.mulf %333, %331 : vector<2x32xf32>
    %335 = arith.mulf %326, %279 : vector<2x32xf32>
    %336 = arith.addf %334, %335 : vector<2x32xf32>
    %337 = tpu.concatenate %336, %304 in 1 : vector<2x32xf32>, vector<2x32xf32> -> vector<2x64xf32>
    %cst_78 = arith.constant dense<0.000000e+00> : vector<2x128xf32>
    %338 = tpu.matmul %337, %22, %cst_78 {dimension_numbers = #tpu.dot_dimension_numbers<[1], [0], [0], [1], [0, 0, 1, 1], [], []>} : vector<2x64xf32>, vector<64x128xf32>, vector<2x128xf32> -> vector<2x128xf32>
    %339 = arith.addf %338, %26 : vector<2x128xf32>
    %340 = vector.extract_strided_slice %339 {offsets = [0, 0], sizes = [2, 32], strides = [1, 1]} : vector<2x128xf32> to vector<2x32xf32>
    %341 = arith.negf %340 : vector<2x32xf32>
    %342 = math.exp %341 : vector<2x32xf32>
    %cst_79 = arith.constant 1.000000e+00 : f32
    %343 = vector.broadcast %cst_79 : f32 to vector<2x32xf32>
    %344 = arith.addf %343, %342 : vector<2x32xf32>
    %345 = arith.divf %343, %344 : vector<2x32xf32>
    %346 = vector.extract_strided_slice %339 {offsets = [0, 32], sizes = [2, 32], strides = [1, 1]} : vector<2x128xf32> to vector<2x32xf32>
    %347 = arith.negf %346 : vector<2x32xf32>
    %348 = math.exp %347 : vector<2x32xf32>
    %cst_80 = arith.constant 1.000000e+00 : f32
    %349 = vector.broadcast %cst_80 : f32 to vector<2x32xf32>
    %350 = arith.addf %349, %348 : vector<2x32xf32>
    %351 = arith.divf %349, %350 : vector<2x32xf32>
    %352 = vector.extract_strided_slice %339 {offsets = [0, 64], sizes = [2, 32], strides = [1, 1]} : vector<2x128xf32> to vector<2x32xf32>
    %353 = vector.extract_strided_slice %339 {offsets = [0, 96], sizes = [2, 32], strides = [1, 1]} : vector<2x128xf32> to vector<2x32xf32>
    %354 = arith.mulf %345, %353 : vector<2x32xf32>
    %355 = arith.addf %352, %354 : vector<2x32xf32>
    %356 = math.tanh %355 : vector<2x32xf32>
    %cst_81 = arith.constant 1.000000e+00 : f32
    %357 = vector.broadcast %cst_81 : f32 to vector<2x32xf32>
    %358 = arith.subf %357, %351 : vector<2x32xf32>
    %359 = arith.mulf %358, %356 : vector<2x32xf32>
    %360 = arith.mulf %351, %304 : vector<2x32xf32>
    %361 = arith.addf %359, %360 : vector<2x32xf32>
    %cst_82 = arith.constant dense<0.000000e+00> : vector<2x4xf32>
    %362 = tpu.matmul %361, %6, %cst_82 {dimension_numbers = #tpu.dot_dimension_numbers<[1], [0], [0], [1], [0, 0, 1, 1], [], []>} : vector<2x32xf32>, vector<32x4xf32>, vector<2x4xf32> -> vector<2x4xf32>
    %363 = arith.addf %362, %9 : vector<2x4xf32>
    %364 = arith.negf %363 : vector<2x4xf32>
    %365 = math.exp %364 : vector<2x4xf32>
    %cst_83 = arith.constant 1.000000e+00 : f32
    %366 = vector.broadcast %cst_83 : f32 to vector<2x4xf32>
    %367 = arith.addf %366, %365 : vector<2x4xf32>
    %368 = arith.divf %366, %367 : vector<2x4xf32>
    %cst_84 = arith.constant dense<0.000000e+00> : vector<2x96xf32>
    %369 = tpu.matmul %336, %5, %cst_84 {dimension_numbers = #tpu.dot_dimension_numbers<[1], [0], [0], [1], [0, 0, 1, 1], [], []>} : vector<2x32xf32>, vector<32x96xf32>, vector<2x96xf32> -> vector<2x96xf32>
    %370 = vector.extract_strided_slice %369 {offsets = [0, 0], sizes = [2, 32], strides = [1, 1]} : vector<2x96xf32> to vector<2x32xf32>
    %371 = arith.addf %18, %370 : vector<2x32xf32>
    %372 = arith.negf %371 : vector<2x32xf32>
    %373 = math.exp %372 : vector<2x32xf32>
    %cst_85 = arith.constant 1.000000e+00 : f32
    %374 = vector.broadcast %cst_85 : f32 to vector<2x32xf32>
    %375 = arith.addf %374, %373 : vector<2x32xf32>
    %376 = arith.divf %374, %375 : vector<2x32xf32>
    %377 = vector.extract_strided_slice %369 {offsets = [0, 32], sizes = [2, 32], strides = [1, 1]} : vector<2x96xf32> to vector<2x32xf32>
    %378 = arith.addf %19, %377 : vector<2x32xf32>
    %379 = arith.negf %378 : vector<2x32xf32>
    %380 = math.exp %379 : vector<2x32xf32>
    %cst_86 = arith.constant 1.000000e+00 : f32
    %381 = vector.broadcast %cst_86 : f32 to vector<2x32xf32>
    %382 = arith.addf %381, %380 : vector<2x32xf32>
    %383 = arith.divf %381, %382 : vector<2x32xf32>
    %384 = vector.extract_strided_slice %369 {offsets = [0, 64], sizes = [2, 32], strides = [1, 1]} : vector<2x96xf32> to vector<2x32xf32>
    %385 = arith.addf %384, %12 : vector<2x32xf32>
    %386 = arith.mulf %376, %385 : vector<2x32xf32>
    %387 = arith.addf %20, %386 : vector<2x32xf32>
    %388 = math.tanh %387 : vector<2x32xf32>
    %cst_87 = arith.constant 1.000000e+00 : f32
    %389 = vector.broadcast %cst_87 : f32 to vector<2x32xf32>
    %390 = arith.subf %389, %383 : vector<2x32xf32>
    %391 = arith.mulf %390, %388 : vector<2x32xf32>
    %392 = arith.mulf %383, %336 : vector<2x32xf32>
    %393 = arith.addf %391, %392 : vector<2x32xf32>
    %394 = tpu.concatenate %393, %361 in 1 : vector<2x32xf32>, vector<2x32xf32> -> vector<2x64xf32>
    %cst_88 = arith.constant dense<0.000000e+00> : vector<2x128xf32>
    %395 = tpu.matmul %394, %22, %cst_88 {dimension_numbers = #tpu.dot_dimension_numbers<[1], [0], [0], [1], [0, 0, 1, 1], [], []>} : vector<2x64xf32>, vector<64x128xf32>, vector<2x128xf32> -> vector<2x128xf32>
    %396 = arith.addf %395, %26 : vector<2x128xf32>
    %397 = vector.extract_strided_slice %396 {offsets = [0, 0], sizes = [2, 32], strides = [1, 1]} : vector<2x128xf32> to vector<2x32xf32>
    %398 = arith.negf %397 : vector<2x32xf32>
    %399 = math.exp %398 : vector<2x32xf32>
    %cst_89 = arith.constant 1.000000e+00 : f32
    %400 = vector.broadcast %cst_89 : f32 to vector<2x32xf32>
    %401 = arith.addf %400, %399 : vector<2x32xf32>
    %402 = arith.divf %400, %401 : vector<2x32xf32>
    %403 = vector.extract_strided_slice %396 {offsets = [0, 32], sizes = [2, 32], strides = [1, 1]} : vector<2x128xf32> to vector<2x32xf32>
    %404 = arith.negf %403 : vector<2x32xf32>
    %405 = math.exp %404 : vector<2x32xf32>
    %cst_90 = arith.constant 1.000000e+00 : f32
    %406 = vector.broadcast %cst_90 : f32 to vector<2x32xf32>
    %407 = arith.addf %406, %405 : vector<2x32xf32>
    %408 = arith.divf %406, %407 : vector<2x32xf32>
    %409 = vector.extract_strided_slice %396 {offsets = [0, 64], sizes = [2, 32], strides = [1, 1]} : vector<2x128xf32> to vector<2x32xf32>
    %410 = vector.extract_strided_slice %396 {offsets = [0, 96], sizes = [2, 32], strides = [1, 1]} : vector<2x128xf32> to vector<2x32xf32>
    %411 = arith.mulf %402, %410 : vector<2x32xf32>
    %412 = arith.addf %409, %411 : vector<2x32xf32>
    %413 = math.tanh %412 : vector<2x32xf32>
    %cst_91 = arith.constant 1.000000e+00 : f32
    %414 = vector.broadcast %cst_91 : f32 to vector<2x32xf32>
    %415 = arith.subf %414, %408 : vector<2x32xf32>
    %416 = arith.mulf %415, %413 : vector<2x32xf32>
    %417 = arith.mulf %408, %361 : vector<2x32xf32>
    %418 = arith.addf %416, %417 : vector<2x32xf32>
    %cst_92 = arith.constant dense<0.000000e+00> : vector<2x4xf32>
    %419 = tpu.matmul %418, %6, %cst_92 {dimension_numbers = #tpu.dot_dimension_numbers<[1], [0], [0], [1], [0, 0, 1, 1], [], []>} : vector<2x32xf32>, vector<32x4xf32>, vector<2x4xf32> -> vector<2x4xf32>
    %420 = arith.addf %419, %9 : vector<2x4xf32>
    %421 = arith.negf %420 : vector<2x4xf32>
    %422 = math.exp %421 : vector<2x4xf32>
    %cst_93 = arith.constant 1.000000e+00 : f32
    %423 = vector.broadcast %cst_93 : f32 to vector<2x4xf32>
    %424 = arith.addf %423, %422 : vector<2x4xf32>
    %425 = arith.divf %423, %424 : vector<2x4xf32>
    %cst_94 = arith.constant dense<0.000000e+00> : vector<2x96xf32>
    %426 = tpu.matmul %393, %5, %cst_94 {dimension_numbers = #tpu.dot_dimension_numbers<[1], [0], [0], [1], [0, 0, 1, 1], [], []>} : vector<2x32xf32>, vector<32x96xf32>, vector<2x96xf32> -> vector<2x96xf32>
    %427 = vector.extract_strided_slice %426 {offsets = [0, 0], sizes = [2, 32], strides = [1, 1]} : vector<2x96xf32> to vector<2x32xf32>
    %428 = arith.addf %18, %427 : vector<2x32xf32>
    %429 = arith.negf %428 : vector<2x32xf32>
    %430 = math.exp %429 : vector<2x32xf32>
    %cst_95 = arith.constant 1.000000e+00 : f32
    %431 = vector.broadcast %cst_95 : f32 to vector<2x32xf32>
    %432 = arith.addf %431, %430 : vector<2x32xf32>
    %433 = arith.divf %431, %432 : vector<2x32xf32>
    %434 = vector.extract_strided_slice %426 {offsets = [0, 32], sizes = [2, 32], strides = [1, 1]} : vector<2x96xf32> to vector<2x32xf32>
    %435 = arith.addf %19, %434 : vector<2x32xf32>
    %436 = arith.negf %435 : vector<2x32xf32>
    %437 = math.exp %436 : vector<2x32xf32>
    %cst_96 = arith.constant 1.000000e+00 : f32
    %438 = vector.broadcast %cst_96 : f32 to vector<2x32xf32>
    %439 = arith.addf %438, %437 : vector<2x32xf32>
    %440 = arith.divf %438, %439 : vector<2x32xf32>
    %441 = vector.extract_strided_slice %426 {offsets = [0, 64], sizes = [2, 32], strides = [1, 1]} : vector<2x96xf32> to vector<2x32xf32>
    %442 = arith.addf %441, %12 : vector<2x32xf32>
    %443 = arith.mulf %433, %442 : vector<2x32xf32>
    %444 = arith.addf %20, %443 : vector<2x32xf32>
    %445 = math.tanh %444 : vector<2x32xf32>
    %cst_97 = arith.constant 1.000000e+00 : f32
    %446 = vector.broadcast %cst_97 : f32 to vector<2x32xf32>
    %447 = arith.subf %446, %440 : vector<2x32xf32>
    %448 = arith.mulf %447, %445 : vector<2x32xf32>
    %449 = arith.mulf %440, %393 : vector<2x32xf32>
    %450 = arith.addf %448, %449 : vector<2x32xf32>
    %451 = tpu.concatenate %450, %418 in 1 : vector<2x32xf32>, vector<2x32xf32> -> vector<2x64xf32>
    %cst_98 = arith.constant dense<0.000000e+00> : vector<2x128xf32>
    %452 = tpu.matmul %451, %22, %cst_98 {dimension_numbers = #tpu.dot_dimension_numbers<[1], [0], [0], [1], [0, 0, 1, 1], [], []>} : vector<2x64xf32>, vector<64x128xf32>, vector<2x128xf32> -> vector<2x128xf32>
    %453 = arith.addf %452, %26 : vector<2x128xf32>
    %454 = vector.extract_strided_slice %453 {offsets = [0, 0], sizes = [2, 32], strides = [1, 1]} : vector<2x128xf32> to vector<2x32xf32>
    %455 = arith.negf %454 : vector<2x32xf32>
    %456 = math.exp %455 : vector<2x32xf32>
    %cst_99 = arith.constant 1.000000e+00 : f32
    %457 = vector.broadcast %cst_99 : f32 to vector<2x32xf32>
    %458 = arith.addf %457, %456 : vector<2x32xf32>
    %459 = arith.divf %457, %458 : vector<2x32xf32>
    %460 = vector.extract_strided_slice %453 {offsets = [0, 32], sizes = [2, 32], strides = [1, 1]} : vector<2x128xf32> to vector<2x32xf32>
    %461 = arith.negf %460 : vector<2x32xf32>
    %462 = math.exp %461 : vector<2x32xf32>
    %cst_100 = arith.constant 1.000000e+00 : f32
    %463 = vector.broadcast %cst_100 : f32 to vector<2x32xf32>
    %464 = arith.addf %463, %462 : vector<2x32xf32>
    %465 = arith.divf %463, %464 : vector<2x32xf32>
    %466 = vector.extract_strided_slice %453 {offsets = [0, 64], sizes = [2, 32], strides = [1, 1]} : vector<2x128xf32> to vector<2x32xf32>
    %467 = vector.extract_strided_slice %453 {offsets = [0, 96], sizes = [2, 32], strides = [1, 1]} : vector<2x128xf32> to vector<2x32xf32>
    %468 = arith.mulf %459, %467 : vector<2x32xf32>
    %469 = arith.addf %466, %468 : vector<2x32xf32>
    %470 = math.tanh %469 : vector<2x32xf32>
    %cst_101 = arith.constant 1.000000e+00 : f32
    %471 = vector.broadcast %cst_101 : f32 to vector<2x32xf32>
    %472 = arith.subf %471, %465 : vector<2x32xf32>
    %473 = arith.mulf %472, %470 : vector<2x32xf32>
    %474 = arith.mulf %465, %418 : vector<2x32xf32>
    %475 = arith.addf %473, %474 : vector<2x32xf32>
    %cst_102 = arith.constant dense<0.000000e+00> : vector<2x4xf32>
    %476 = tpu.matmul %475, %6, %cst_102 {dimension_numbers = #tpu.dot_dimension_numbers<[1], [0], [0], [1], [0, 0, 1, 1], [], []>} : vector<2x32xf32>, vector<32x4xf32>, vector<2x4xf32> -> vector<2x4xf32>
    %477 = arith.addf %476, %9 : vector<2x4xf32>
    %478 = arith.negf %477 : vector<2x4xf32>
    %479 = math.exp %478 : vector<2x4xf32>
    %cst_103 = arith.constant 1.000000e+00 : f32
    %480 = vector.broadcast %cst_103 : f32 to vector<2x4xf32>
    %481 = arith.addf %480, %479 : vector<2x4xf32>
    %482 = arith.divf %480, %481 : vector<2x4xf32>
    %483 = tpu.concatenate %83, %140, %197, %254, %311, %368, %425, %482 in 1 : vector<2x4xf32>, vector<2x4xf32>, vector<2x4xf32>, vector<2x4xf32>, vector<2x4xf32>, vector<2x4xf32>, vector<2x4xf32>, vector<2x4xf32> -> vector<2x32xf32>
    %c0_104 = arith.constant 0 : index
    %c0_105 = arith.constant 0 : index
    %484 = vector.load %arg10[%c0_104, %c0_105] : memref<2x32xf32, #tpu.memory_space<vmem>>, vector<2x32xf32>
    tpu.vector_store %arg10[%c0_104, %c0_105], %483 {strides = array<i32>} : memref<2x32xf32, #tpu.memory_space<vmem>>, vector<2x32xf32>,
    return
  }
}

</mosaic_0001>

<bundles_post_ra>
// kernel: tpu_custom_call.1
= control target key start
LH: loop header
LB: loop body
LE: loop exit
PB: predicated region body
PF: predicated region fallthrough
CT: control target
= control target key end

     0   :  { %15 = vsyncpa [#allocation3], 0  ;;  %s4440_s0 = inlined_call_operand.hbm [shape: f32[2,32], index: 0, kind: input, shape index: {}]   ;;  %s4441_s1 = inlined_call_operand.hbm [shape: f32[2,2,32], index: 1, kind: input, shape index: {}]   ;;  %s4442_s2 = inlined_call_operand.hbm [shape: f32[32,96], index: 2, kind: input, shape index: {}]   ;;  %s4443_s3 = inlined_call_operand.hbm [shape: f32[32,96], index: 3, kind: input, shape index: {}]   ;;  %s4444_s4 = inlined_call_operand.hbm [shape: f32[1,96], index: 4, kind: input, shape index: {}]   ;;  %s4445_s5 = inlined_call_operand.hbm [shape: f32[1,32], index: 5, kind: input, shape index: {}]   ;;  %s4446_s6 = inlined_call_operand.hbm [shape: f32[1,64,128], index: 6, kind: input, shape index: {}]   ;;  %s4447_s7 = inlined_call_operand.hbm [shape: f32[1,1,128], index: 7, kind: input, shape index: {}]   ;;  %s4448_s8 = inlined_call_operand.hbm [shape: f32[32,4], index: 8, kind: input, shape index: {}]   ;;  %s4449_s9 = inlined_call_operand.hbm [shape: f32[1,4], index: 9, kind: input, shape index: {}]   ;;  %s4450_s10 = inlined_call_operand.hbm [shape: f32[2,32], index: 10, kind: output, shape index: {}]  }
   0x1   :  { %16 = vsyncpa [#allocation6], 0 }
   0x2   :  { %17 = vsyncpa [#allocation9], 0 }
   0x3   :  { %18 = vsyncpa [#allocation12], 0 }
   0x4   :  { %19 = vsyncpa [#allocation15], 0 }
   0x5   :  { %20 = vsyncpa [#allocation18], 0 }
   0x6   :  { %21 = vsyncpa [#allocation4], 0  ;;  %s3785_s13 = smov [#allocation5]   ;;  %s3529_s17 = scalar_lea.hbm %s4441_s1, 64 }
   0x7   :  { %s37_s14 = sshll.u32 %s3785_s13, 4  ;;  %p3530_p0 = scmp.ne.s32.totalorder %s4441_s1, %s3529_s17  ;;  %s38_s14 = int_to_ptr.vmem [resolvable:$true] %s37_s14 }
   0x8   :  { %p3533_p1 = scmp.lt.u32.totalorder %s3529_s17, %s4441_s1 }
   0xa   :  { %p3535_p2 = pnand %p3533_p1, %p3530_p0 }
   0xc   :  { %3538 = shalt.err (!%p3535_p2)
}
   0xd   :  { %s3539_s22 = scalar_lea.vmem %s38_s14, 64  ;;  %p3544_p4 = scmp.lt.s32.totalorder %s38_s14, %s38_s14 }
   0xe   :  { %p3540_p3 = scmp.ne.s32.totalorder %s38_s14, %s3539_s22  ;;  %p3545_p5 = scmp.lt.s32.totalorder %s3539_s22, %s3539_s22 }
  0x10   :  { %p3546_p6 = por %p3545_p5, %p3544_p4 }
  0x12   :  { %p3547_p7 = pnand %p3546_p6, %p3540_p3 }
  0x14   :  { %3550 = shalt.err (!%p3547_p7)
}
  0x15   :  { %s3786_s23 = smov 32   ;;  %s3787_s24 = smov 2  }
  0x16   :  { %43 = dma.hbm_to_vmem [thread:$0]  %s4441_s1, 64, %s38_s14, [#allocation6], %s3786_s23, %s3786_s23, %s3787_s24  }
  0x17   :  { %s3788_s27 = smov [#allocation8]   ;;  %s3789_s29 = smov [#allocation11]  }
  0x18   :  { %s61_s28 = sshll.u32 %s3788_s27, 4  ;;  %s84_s30 = sshll.u32 %s3789_s29, 4  ;;  %s62_s28 = int_to_ptr.vmem [resolvable:$true] %s61_s28  ;;  %s85_s30 = int_to_ptr.vmem [resolvable:$true] %s84_s30 }
  0x19   :  { %s3551_s13 = scalar_lea.hbm %s4443_s3, 512 }
  0x1a   :  { %p3552_p8 = scmp.ne.s32.totalorder %s4443_s3, %s3551_s13  ;;  %p3555_p9 = scmp.lt.u32.totalorder %s3551_s13, %s4443_s3 }
  0x1c   :  { %p3557_p10 = pnand %p3555_p9, %p3552_p8 }
  0x1e   :  { %3560 = shalt.err (!%p3557_p10)
}
  0x1f   :  { %s3561_s1 = scalar_lea.vmem %s62_s28, 512  ;;  %p3566_p12 = scmp.lt.s32.totalorder %s62_s28, %s62_s28 }
  0x20   :  { %p3562_p11 = scmp.ne.s32.totalorder %s62_s28, %s3561_s1  ;;  %p3567_p13 = scmp.lt.s32.totalorder %s3561_s1, %s3561_s1 }
  0x22   :  { %p3568_p0 = por %p3567_p13, %p3566_p12 }
  0x24   :  { %p3569_p1 = pnand %p3568_p0, %p3562_p11 }
  0x26   :  { %3572 = shalt.err (!%p3569_p1)
}
  0x27   :  { %s3790_s14 = smov 128   ;;  %s3791_s19 = smov 8  }
  0x28   :  { %67 = dma.hbm_to_vmem [thread:$0]  %s4443_s3, 512, %s62_s28, [#allocation9], %s3790_s14, %s3790_s14, %s3791_s19  }
  0x29   :  { %s3573_s25 = scalar_lea.hbm %s4445_s5, 16 }
  0x2a   :  { %p3574_p2 = scmp.ne.s32.totalorder %s4445_s5, %s3573_s25  ;;  %p3577_p3 = scmp.lt.u32.totalorder %s3573_s25, %s4445_s5 }
  0x2c   :  { %p3579_p4 = pnand %p3577_p3, %p3574_p2 }
  0x2e   :  { %3582 = shalt.err (!%p3579_p4)
}
  0x2f   :  { %s3583_s12 = scalar_lea.vmem %s85_s30, 16  ;;  %s3587_s13 = scalar_lea.vmem %s85_s30, 32 }
  0x30   :  { %p3584_p5 = scmp.ne.s32.totalorder %s85_s30, %s3583_s12  ;;  %p3588_p6 = scmp.lt.s32.totalorder %s85_s30, %s85_s30 }
  0x31   :  { %p3589_p7 = scmp.lt.s32.totalorder %s3587_s13, %s3583_s12 }
  0x33   :  { %p3590_p8 = por %p3589_p7, %p3588_p6 }
  0x35   :  { %p3591_p9 = pnand %p3590_p8, %p3584_p5 }
  0x37   :  { %3594 = shalt.err (!%p3591_p9)
}
  0x38   :  { %87 = dma.hbm_to_vmem [thread:$0]  %s4445_s5, 16, %s85_s30, [#allocation12]  }
  0x39   :  { %s3792_s15 = smov [#allocation14]   ;;  %s3793_s17 = smov [#allocation2]  }
  0x3a   :  { %s106_s16 = sshll.u32 %s3792_s15, 4  ;;  %s28_s18 = sshll.u32 %s3793_s17, 4  ;;  %s107_s16 = int_to_ptr.vmem [resolvable:$true] %s106_s16  ;;  %s29_s18 = int_to_ptr.vmem [resolvable:$true] %s28_s18 }
  0x3b   :  { %s3595_s21 = scalar_lea.hbm %s4447_s7, 16 }
  0x3c   :  { %p3596_p10 = scmp.ne.s32.totalorder %s4447_s7, %s3595_s21  ;;  %p3599_p11 = scmp.lt.u32.totalorder %s3595_s21, %s4447_s7 }
  0x3e   :  { %p3601_p12 = pnand %p3599_p11, %p3596_p10 }
  0x40   :  { %3604 = shalt.err (!%p3601_p12)
}
  0x41   :  { %s3605_s5 = scalar_lea.vmem %s107_s16, 16  ;;  %s3609_s30 = scalar_lea.vmem %s107_s16, 32 }
  0x42   :  { %p3606_p13 = scmp.ne.s32.totalorder %s107_s16, %s3605_s5  ;;  %p3610_p0 = scmp.lt.s32.totalorder %s107_s16, %s107_s16 }
  0x43   :  { %p3611_p1 = scmp.lt.s32.totalorder %s3609_s30, %s3605_s5 }
  0x45   :  { %p3612_p2 = por %p3611_p1, %p3610_p0 }
  0x47   :  { %p3613_p3 = pnand %p3612_p2, %p3606_p13 }
  0x49   :  { %3616 = shalt.err (!%p3613_p3)
}
  0x4a   :  { %109 = dma.hbm_to_vmem [thread:$0]  %s4447_s7, 16, %s107_s16, [#allocation15]  }
  0x4b   :  { %s3617_s13 = scalar_lea.hbm %s4440_s0, 32 }
  0x4c   :  { %p3618_p4 = scmp.ne.s32.totalorder %s4440_s0, %s3617_s13  ;;  %p3621_p5 = scmp.lt.u32.totalorder %s3617_s13, %s4440_s0 }
  0x4e   :  { %p3623_p6 = pnand %p3621_p5, %p3618_p4 }
  0x50   :  { %3626 = shalt.err (!%p3623_p6)
}
  0x51   :  { %s3627_s1 = scalar_lea.vmem %s29_s18, 32  ;;  %p3632_p8 = scmp.lt.s32.totalorder %s29_s18, %s29_s18 }
  0x52   :  { %p3628_p7 = scmp.ne.s32.totalorder %s29_s18, %s3627_s1  ;;  %p3633_p9 = scmp.lt.s32.totalorder %s3627_s1, %s3627_s1 }
  0x54   :  { %p3634_p10 = por %p3633_p9, %p3632_p8 }
  0x56   :  { %p3635_p11 = pnand %p3634_p10, %p3628_p7 }
  0x58   :  { %3638 = shalt.err (!%p3635_p11)
}
  0x59   :  { %31 = dma.hbm_to_vmem [thread:$0]  %s4440_s0, 32, %s29_s18, [#allocation3]  }
  0x5a   :  { %s3794_s20 = smov [#allocation7]   ;;  %s3795_s22 = smov [#allocation10]  }
  0x5b   :  { %s49_s21 = sshll.u32 %s3794_s20, 4  ;;  %s74_s24 = sshll.u32 %s3795_s22, 4  ;;  %s50_s21 = int_to_ptr.vmem [resolvable:$true] %s49_s21  ;;  %s75_s24 = int_to_ptr.vmem [resolvable:$true] %s74_s24 }
  0x5c   :  { %s3639_s5 = scalar_lea.hbm %s4442_s2, 512 }
  0x5d   :  { %p3640_p12 = scmp.ne.s32.totalorder %s4442_s2, %s3639_s5  ;;  %p3643_p13 = scmp.lt.u32.totalorder %s3639_s5, %s4442_s2 }
  0x5f   :  { %p3645_p0 = pnand %p3643_p13, %p3640_p12 }
  0x61   :  { %3648 = shalt.err (!%p3645_p0)
}
  0x62   :  { %s3649_s0 = scalar_lea.vmem %s50_s21, 512  ;;  %p3654_p2 = scmp.lt.s32.totalorder %s50_s21, %s50_s21 }
  0x63   :  { %p3650_p1 = scmp.ne.s32.totalorder %s50_s21, %s3649_s0  ;;  %p3655_p3 = scmp.lt.s32.totalorder %s3649_s0, %s3649_s0 }
  0x65   :  { %p3656_p4 = por %p3655_p3, %p3654_p2 }
  0x67   :  { %p3657_p5 = pnand %p3656_p4, %p3650_p1 }
  0x69   :  { %3660 = shalt.err (!%p3657_p5)
}
  0x6a   :  { %55 = dma.hbm_to_vmem [thread:$0]  %s4442_s2, 512, %s50_s21, [#allocation6], %s3790_s14, %s3790_s14, %s3791_s19  }
  0x6b   :  { %s3661_s28 = scalar_lea.hbm %s4444_s4, 16 }
  0x6c   :  { %p3662_p6 = scmp.ne.s32.totalorder %s4444_s4, %s3661_s28  ;;  %p3665_p7 = scmp.lt.u32.totalorder %s3661_s28, %s4444_s4 }
  0x6e   :  { %p3667_p8 = pnand %p3665_p7, %p3662_p6 }
  0x70   :  { %3670 = shalt.err (!%p3667_p8)
}
  0x71   :  { %s3671_s16 = scalar_lea.vmem %s75_s24, 16  ;;  %s3675_s20 = scalar_lea.vmem %s75_s24, 32 }
  0x72   :  { %p3672_p9 = scmp.ne.s32.totalorder %s75_s24, %s3671_s16  ;;  %p3676_p10 = scmp.lt.s32.totalorder %s75_s24, %s75_s24 }
  0x73   :  { %p3677_p11 = scmp.lt.s32.totalorder %s3675_s20, %s3671_s16 }
  0x75   :  { %p3678_p12 = por %p3677_p11, %p3676_p10 }
  0x77   :  { %p3679_p13 = pnand %p3678_p12, %p3672_p9 }
  0x79   :  { %3682 = shalt.err (!%p3679_p13)
}
  0x7a   :  { %77 = dma.hbm_to_vmem [thread:$0]  %s4444_s4, 16, %s75_s24, [#allocation9]  }
  0x7b   :  { %s3796_s22 = smov [#allocation13]   ;;  %s3797_s26 = smov [#allocation16]  }
  0x7c   :  { %s93_s25 = sshll.u32 %s3796_s22, 4  ;;  %s115_s5 = sshll.u32 %s3797_s26, 4  ;;  %s94_s25 = int_to_ptr.vmem [resolvable:$true] %s93_s25  ;;  %s116_s5 = int_to_ptr.vmem [resolvable:$true] %s115_s5 }
  0x7d   :  { %s3683_s29 = scalar_lea.hbm %s4446_s6, 1024 }
  0x7e   :  { %p3684_p0 = scmp.ne.s32.totalorder %s4446_s6, %s3683_s29  ;;  %p3687_p1 = scmp.lt.u32.totalorder %s3683_s29, %s4446_s6 }
  0x80   :  { %p3689_p2 = pnand %p3687_p1, %p3684_p0 }
  0x82   :  { %3692 = shalt.err (!%p3689_p2)
}
  0x83   :  { %s3693_s4 = scalar_lea.vmem %s94_s25, 1024  ;;  %p3698_p4 = scmp.lt.s32.totalorder %s94_s25, %s94_s25 }
  0x84   :  { %p3694_p3 = scmp.ne.s32.totalorder %s94_s25, %s3693_s4  ;;  %p3699_p5 = scmp.lt.s32.totalorder %s3693_s4, %s3693_s4 }
  0x86   :  { %p3700_p6 = por %p3699_p5, %p3698_p4 }
  0x88   :  { %p3701_p7 = pnand %p3700_p6, %p3694_p3 }
  0x8a   :  { %3704 = shalt.err (!%p3701_p7)
}
  0x8b   :  { %99 = dma.hbm_to_vmem [thread:$0]  %s4446_s6, 1024, %s94_s25, [#allocation12], %s3790_s14, %s3790_s14, %s3791_s19  }
  0x8c   :  { %s3705_s15 = scalar_lea.hbm %s4448_s8, 512 }
  0x8d   :  { %p3706_p8 = scmp.ne.s32.totalorder %s4448_s8, %s3705_s15  ;;  %p3709_p9 = scmp.lt.u32.totalorder %s3705_s15, %s4448_s8 }
  0x8f   :  { %p3711_p10 = pnand %p3709_p9, %p3706_p8 }
  0x91   :  { %3714 = shalt.err (!%p3711_p10)
}
  0x92   :  { %s3715_s20 = scalar_lea.vmem %s116_s5, 512  ;;  %p3720_p12 = scmp.lt.s32.totalorder %s116_s5, %s116_s5 }
  0x93   :  { %p3716_p11 = scmp.ne.s32.totalorder %s116_s5, %s3715_s20  ;;  %p3721_p13 = scmp.lt.s32.totalorder %s3715_s20, %s3715_s20 }
  0x95   :  { %p3722_p0 = por %p3721_p13, %p3720_p12 }
  0x97   :  { %p3723_p1 = pnand %p3722_p0, %p3716_p11 }
  0x99   :  { %3726 = shalt.err (!%p3723_p1)
}
  0x9a   :  { %121 = dma.hbm_to_vmem [thread:$0]  %s4448_s8, 512, %s116_s5, [#allocation15], %s3790_s14, %s3790_s14, %s3791_s19  }
  0x9b   :  { %s3798_s21 = smov [#allocation17]   ;;  %s3727_s30 = scalar_lea.hbm %s4449_s9, 16 }
  0x9c   :  { %s128_s22 = sshll.u32 %s3798_s21, 4  ;;  %p3728_p2 = scmp.ne.s32.totalorder %s4449_s9, %s3727_s30  ;;  %s129_s22 = int_to_ptr.vmem [resolvable:$true] %s128_s22 }
  0x9d   :  { %p3731_p3 = scmp.lt.u32.totalorder %s3727_s30, %s4449_s9 }
  0x9f   :  { %p3733_p4 = pnand %p3731_p3, %p3728_p2 }
  0xa1   :  { %3736 = shalt.err (!%p3733_p4)
}
  0xa2   :  { %s3737_s18 = scalar_lea.vmem %s129_s22, 16  ;;  %s3741_s8 = scalar_lea.vmem %s129_s22, 32 }
  0xa3   :  { %p3738_p5 = scmp.ne.s32.totalorder %s129_s22, %s3737_s18  ;;  %p3742_p6 = scmp.lt.s32.totalorder %s129_s22, %s129_s22 }
  0xa4   :  { %p3743_p7 = scmp.lt.s32.totalorder %s3741_s8, %s3737_s18 }
  0xa6   :  { %p3744_p8 = por %p3743_p7, %p3742_p6 }
  0xa8   :  { %p3745_p9 = pnand %p3744_p8, %p3738_p5 }
  0xaa   :  { %3748 = shalt.err (!%p3745_p9)
}
  0xab   :  { %131 = dma.hbm_to_vmem [thread:$0]  %s4449_s9, 16, %s129_s22, [#allocation18]  }
  0xac   :  { %3771 = dma.done.wait [#allocation3], 32  }
  0xad   :  { %3772 = vsyncadd [#allocation3], 4294967264 }
  0xae   :  { %3773 = dma.done.wait [#allocation6], 576  }
  0xaf   :  { %3774 = vsyncadd [#allocation6], 4294966720 }
  0xb0   :  { %3775 = dma.done.wait [#allocation9], 528  }
  0xb1   :  { %3776 = vsyncadd [#allocation9], 4294966768 }
  0xb2   :  { %3777 = dma.done.wait [#allocation12], 1040  }
  0xb3   :  { %3778 = vsyncadd [#allocation12], 4294966256 }
  0xb4   :  { %3779 = dma.done.wait [#allocation15], 528  }
  0xb5   :  { %3780 = vsyncadd [#allocation15], 4294966768 }
  0xb6   :  { %3781 = dma.done.wait [#allocation18], 16  }
  0xb7   :  { %3782 = vsyncadd [#allocation18], 4294967280  ;;  %v3799_v0 = vmov 0.0|0.0   ;;  %vm3800_vm0 = vmmov 0   ;;  %v3801_v1 = vmov 0.0   ;;  %v187_v2 = vld [vmem:[#allocation7] sm:$0xff] }
  0xb8   :  { %3176 = vmatprep.subr.bf16.mxu0 %v3799_v0  ;;  %3182 = vmatprep.subr.bf16.mxu1 %v3799_v0  ;;  %v188_v3 = vld [vmem:[#allocation7 + $0x8] sm:$0xff]  ;;  %v166_v4 = vld [vmem:[#allocation8] sm:$0xff]  ;;  %v189_v7 = vld [vmem:[#allocation7 + $0x10] sm:$0xff]  ;;  %s3802_s9 = smov 64   ;;  %vm198_vm1 = vcmask 261120   ;;  %s3803_s12 = smov 96  }
  0xb9   :  { %2845 = vmatprep.mubr.msk.f32.mxu0 %vm3800_vm0, %v3801_v1  ;;  %2856 = vmatprep.mubr.msk.f32.mxu1 %vm3800_vm0, %v3801_v1  ;;  %v3177_v5 = vpack.c.bf16 %v188_v3, %v187_v2  ;;  %v167_v6 = vld [vmem:[#allocation8 + $0x8] sm:$0xff]  ;;  %v190_v8 = vld [vmem:[#allocation7 + $0x18] sm:$0xff]  ;;  %v168_v10 = vld [vmem:[#allocation8 + $0x10] sm:$0xff]  ;;  %vm402_vm2 = vcmask 523264   ;;  %s3805_s4 = smov 12   ;;  %s3806_s24 = smov 20  }
  0xba   :  { %v4006_v9 = vpack.c.bf16 %v167_v6, %v166_v4  ;;  %v169_v11 = vld [vmem:[#allocation8 + $0x18] sm:$0xff]  ;;  %v3180_v12 = vpack.c.bf16 %v190_v8, %v189_v7  ;;  %v2628_v13 = vld [vmem:[#allocation11] ss:$0 sm:$0xff]  ;;  %v2629_v23 = vld [vmem:[#allocation10] ss:$0 sm:$0xff]  ;;  %s3807_s13 = smov 16  }
  0xbb   :  { %3178 = vmatpush3.bf16.msra.mxu0 %v3177_v5  ;;  %v4010_v14 = vpack.c.bf16 %v169_v11, %v168_v10  ;;  %367 = vrot.lane.b32.xlu0 %v2628_v13, %s3802_s9  ;;  %v162_v15 = vld [vmem:[#allocation2] sm:$0x3]  ;;  %v163_v16 = vld [vmem:[#allocation5] sm:$0x3]  ;;  %v165_v34 = vld [vmem:[#allocation5 + $0x2] sm:$0x3] }
  0xbc   :  { %3184 = vmatpush3.bf16.msra.mxu1 %v4006_v9  ;;  %3179 = vmatprep.subr.bf16.mxu0 %v3799_v0  ;;  %v272_v35 = vld [vmem:[#allocation13] sm:$0xff]  ;;  %v273_v36 = vld [vmem:[#allocation13 + $0x8] sm:$0xff]  ;;  %v274_v37 = vld [vmem:[#allocation13 + $0x10] sm:$0xff]  ;;  %s3808_s3 = smov 24   ;;  %vm2591_vm3 = vcmask 31744   ;;  %vm2593_vm4 = vcmask 64512  }
  0xbd   :  { %3185 = vmatprep.subr.bf16.mxu1 %v3799_v0  ;;  %v4034_v38 = vpack.c.bf16 %v273_v36, %v272_v35  ;;  %v275_v39 = vld [vmem:[#allocation13 + $0x18] sm:$0xff]  ;;  %v276_v41 = vld [vmem:[#allocation13 + $0x20] sm:$0xff]  ;;  %v277_v42 = vld [vmem:[#allocation13 + $0x28] sm:$0xff]  ;;  %vm2595_vm5 = vcmask 97280   ;;  %vm2597_vm6 = vcmask 130048   ;;  %vm2599_vm7 = vcmask 162816  }
  0xbe   :  { %v4037_v40 = vpack.c.bf16 %v275_v39, %v274_v37  ;;  %v4041_v43 = vpack.c.bf16 %v277_v42, %v276_v41  ;;  %v278_v45 = vld [vmem:[#allocation13 + $0x30] sm:$0xff]  ;;  %v279_v46 = vld [vmem:[#allocation13 + $0x38] sm:$0xff]  ;;  %v4067_v57 = vld [vmem:[#allocation14] ss:$0 sm:$0xff]  ;;  %vm2601_vm8 = vcmask 195584   ;;  %s3810_s28 = smov [#allocation19]  }
  0xbf   :  { %3181 = vmatpush3.bf16.msra.mxu0 %v3180_v12  ;;  %v4046_v47 = vpack.c.bf16 %v279_v46, %v278_v45  ;;  %v170_v7 = vld [vmem:[#allocation16] sm:$0xff]  ;;  %v171_v8 = vld [vmem:[#allocation16 + $0x8] sm:$0xff]  ;;  %v172_v10 = vld [vmem:[#allocation16 + $0x10] sm:$0xff]  ;;  %s2613_s15 = sshll.u32 %s3810_s28, 4  ;;  %vm2603_vm9 = vcmask 228352   ;;  %vm2605_vm10 = vcmask 254976   ;;  %s2614_s15 = int_to_ptr.vmem [resolvable:$true] %s2613_s15 }
  0xc0   :  { %3187 = vmatpush3.bf16.msra.mxu1 %v4010_v14  ;;  %3188 = vmatprep.subr.bf16.mxu0 %v3799_v0  ;;  %v4072_v11 = vpack.c.bf16 %v171_v8, %v170_v7  ;;  %v173_v12 = vld [vmem:[#allocation16 + $0x18] sm:$0xff]  ;;  %s3749_s17 = scalar_lea.vmem %s2614_s15, 32  ;;  %p3754_p11 = scmp.lt.s32.totalorder %s2614_s15, %s2614_s15 }
  0xc1   :  { %3200 = vmatprep.subr.bf16.mxu1 %v3799_v0  ;;  %v4075_v13 = vpack.c.bf16 %v173_v12, %v172_v10  ;;  %p3750_p10 = scmp.ne.s32.totalorder %s2614_s15, %s3749_s17  ;;  %p3755_p12 = scmp.lt.s32.totalorder %s3749_s17, %s3749_s17 }
  0xc2   :  { %2846 = vmatmul.mubr.msk.f32.vlgmr.msra.gmra.mrb[0].mxu0 %vm198_vm1, %v162_v15 }
  0xc3   :  { %2857 = vmatmul.mubr.msk.f32.vlgmr.msra.gmra.mrb[0].mxu1 %vm198_vm1, %v163_v16  ;;  %2875 = vmatprep.mubr.msk.f32.mxu0 %vm3800_vm0, %v3801_v1  ;;  %p3756_p13 = por %p3755_p12, %p3754_p11 }
  0xc4   :  { %2886 = vmatprep.mubr.msk.f32.mxu1 %vm3800_vm0, %v3801_v1  ;;  %3190 = vmatpush3.bf16.msra.mxu0 %v4034_v38 }
  0xc5   :  { %3191 = vmatprep.subr.bf16.mxu0 %v3799_v0  ;;  %3202 = vmatpush3.bf16.msra.mxu1 %v4072_v11  ;;  %p3757_p0 = pnand %p3756_p13, %p3750_p10 }
  0xc6   :  { %3203 = vmatprep.subr.bf16.mxu1 %v3799_v0 }
  0xc8   :  { %3193 = vmatpush3.bf16.msra.mxu0 %v4037_v40 }
  0xc9   :  { %3194 = vmatprep.subr.bf16.mxu0 %v3799_v0  ;;  %3205 = vmatpush3.bf16.msra.mxu1 %v4075_v13 }
  0xca   :  { %3206 = vmatprep.subr.bf16.mxu1 %v3799_v0 }
  0xcc   :  { %3196 = vmatpush3.bf16.msra.mxu0 %v4041_v43 }
  0xcd   :  { %3197 = vmatprep.subr.bf16.mxu0 %v3799_v0 }
  0xd0   :  { %3199 = vmatpush3.bf16.msra.mxu0 %v4046_v47 }
  0xd1   :  { %3212 = vmatprep.subr.bf16.mxu0 %v3799_v0 }
 0x12d   :  { %v4023_v17 = vpop.permute.xlu0 %367 }
 0x195   :  { %v268_v18 = vpop.f32.mrb[0].mxu0 }
 0x196   :  { %v356_v19 = vpop.f32.mrb[0].mxu1  ;;  %v2847_v20 = vpop.f32.mrb[1].mxu0  ;;  %v4028_v24 = vadd.f32 %v2629_v23, %v268_v18 }
 0x197   :  { %v370_v21 = vadd.f32 %v4023_v17, %v356_v19  ;;  %v2858_v22 = vpop.f32.mrb[1].mxu1 }
 0x198   :  { %v360_v25 = vadd.f32 %v356_v19, %v4028_v24 }
 0x199   :  { %372 = vrot.lane.b32.xlu0 %v370_v21, %s3802_s9 }
 0x19a   :  { %v2633_v26 = vmul.f32 -1.442695, %v360_v25 }
 0x19c   :  { %3400 = vpow2.f32 %v2633_v26 }
 0x19d   :  { %388 = vrot.lane.b32.xlu0 %v163_v16, %s3786_s23 }
 0x1a1   :  { %398 = vrot.lane.b32.xlu0 %v165_v34, %s3786_s23 }
 0x1a6   :  { %v3401_v27 = vpop.eup %3400 }
 0x1a7   :  { %v364_v28 = vadd.f32 1.0, %v3401_v27 }
 0x1a9   :  { %3402 = vrcp.f32 %v364_v28 }
 0x1b3   :  { %v3403_v29 = vpop.eup %3402 }
 0x1b4   :  { %v382_v49 = vsub.f32 1.0, %v3403_v29 }
 0x20b   :  { %v373_v30 = vpop.permute.xlu0 %372 }
 0x20c   :  { %v375_v31 = vmul.f32 %v3403_v29, %v373_v30 }
 0x20e   :  { %377 = vrot.lane.b32.xlu1 %v375_v31, %s3802_s9 }
 0x20f   :  { %v389_v48 = vpop.permute.xlu0 %388 }
 0x210   :  { %v391_v51 = vmul.f32 %v3403_v29, %v389_v48 }
 0x213   :  { %v399_v54 = vpop.permute.xlu0 %398 }
 0x280   :  { %v378_v32 = vpop.permute.xlu1 %377 }
 0x281   :  { %v380_v33 = vadd.f32 %v378_v32, %v4028_v24 }
 0x283   :  { %3404 = vtanh.f32 %v380_v33 }
 0x28d   :  { %v3405_v44 = vpop.eup %3404 }
 0x28e   :  { %384 = vrot.lane.b32.xlu1 %v3405_v44, %s3803_s12 }
 0x300   :  { %v385_v50 = vpop.permute.xlu1 %384 }
 0x301   :  { %v387_v52 = vmul.f32 %v385_v50, %v382_v49 }
 0x303   :  { %v4051_v53 = vadd.f32 %v391_v51, %v387_v52 }
 0x305   :  { %394 = vrot.lane.b32.xlu1 %v4051_v53, %s3803_s12 }
 0x377   :  { %v395_v55 = vpop.permute.xlu1 %394 }
 0x378   :  { %v401_v56 = vsel %vm198_vm1, %v395_v55, %v399_v54 }
 0x379   :  { %2876 = vmatmul.mubr.msk.f32.vlgmr.msra.gmra.mrb[2].mxu0 %vm402_vm2, %v401_v56 }
 0x37a   :  { %3214 = vmatpush3.bf16.msra.mxu0 %v4034_v38  ;;  %2916 = vmatprep.mubr.msk.f32.mxu0 %vm3800_vm0, %v3801_v1 }
 0x37b   :  { %3215 = vmatprep.subr.bf16.mxu0 %v3799_v0 }
 0x37e   :  { %3217 = vmatpush3.bf16.msra.mxu0 %v4037_v40 }
 0x37f   :  { %3218 = vmatprep.subr.bf16.mxu0 %v3799_v0 }
 0x382   :  { %3220 = vmatpush3.bf16.msra.mxu0 %v4041_v43 }
 0x383   :  { %3221 = vmatprep.subr.bf16.mxu0 %v3799_v0 }
 0x386   :  { %3223 = vmatpush3.bf16.msra.mxu0 %v4046_v47 }
 0x387   :  { %3236 = vmatprep.subr.bf16.mxu0 %v3799_v0 }
 0x44c   :  { %v472_v58 = vpop.f32.mrb[2].mxu0 }
 0x44d   :  { %v473_v59 = vadd.f32 %v4067_v57, %v472_v58  ;;  %v2877_v60 = vpop.f32.mrb[3].mxu0 }
 0x44f   :  { %483 = vrot.lane.b32.xlu1 %v473_v59, %s3786_s23  ;;  %v2635_v61 = vmul.f32 -1.442695, %v473_v59 }
 0x451   :  { %3406 = vpow2.f32 %v2635_v61 }
 0x45b   :  { %v3407_v62 = vpop.eup %3406 }
 0x45c   :  { %v479_v63 = vadd.f32 1.0, %v3407_v62 }
 0x45e   :  { %3408 = vrcp.f32 %v479_v63 }
 0x468   :  { %v3409_v2 = vpop.eup %3408 }
 0x469   :  { %v493_v16 = vsub.f32 1.0, %v3409_v2  ;;  %v499_v19 = vmul.f32 %v3409_v2, %v399_v54 }
 0x4c1   :  { %v484_v3 = vpop.permute.xlu1 %483 }
 0x4c2   :  { %v486_v4 = vmul.f32 %v3409_v2, %v484_v3 }
 0x4c4   :  { %488 = vrot.lane.b32.xlu0 %v486_v4, %s3802_s9 }
 0x536   :  { %v489_v5 = vpop.permute.xlu0 %488 }
 0x537   :  { %v491_v6 = vadd.f32 %v489_v5, %v473_v59 }
 0x539   :  { %3410 = vtanh.f32 %v491_v6 }
 0x543   :  { %v3411_v15 = vpop.eup %3410 }
 0x544   :  { %495 = vrot.lane.b32.xlu1 %v3411_v15, %s3803_s12 }
 0x5b6   :  { %v496_v18 = vpop.permute.xlu1 %495 }
 0x5b7   :  { %v498_v20 = vmul.f32 %v496_v18, %v493_v16 }
 0x5b9   :  { %v4081_v21 = vadd.f32 %v499_v19, %v498_v20 }
 0x5bb   :  { %502 = vrot.lane.b32.xlu0 %v4081_v21, %s3803_s12 }
 0x62d   :  { %v503_v22 = vpop.permute.xlu0 %502 }
 0x62e   :  { %2887 = vmatmul.mubr.msk.f32.vlgmr.msra.gmra.mrb[2].mxu1 %vm198_vm1, %v503_v22 }
 0x62f   :  { %3208 = vmatpush3.bf16.msra.mxu1 %v4006_v9  ;;  %2897 = vmatprep.mubr.msk.f32.mxu1 %vm3800_vm0, %v3801_v1 }
 0x630   :  { %3209 = vmatprep.subr.bf16.mxu1 %v3799_v0 }
 0x633   :  { %3211 = vmatpush3.bf16.msra.mxu1 %v4010_v14 }
 0x634   :  { %3224 = vmatprep.subr.bf16.mxu1 %v3799_v0 }
 0x636   :  { %2898 = vmatmul.mubr.msk.f32.vlgmr.msra.gmra.mrb[4].mxu1 %vm198_vm1, %v395_v55 }
 0x637   :  { %3226 = vmatpush3.bf16.msra.mxu1 %v4072_v11  ;;  %2927 = vmatprep.mubr.msk.f32.mxu1 %vm3800_vm0, %v3801_v1 }
 0x638   :  { %3227 = vmatprep.subr.bf16.mxu1 %v3799_v0 }
 0x63b   :  { %3229 = vmatpush3.bf16.msra.mxu1 %v4075_v13 }
 0x63c   :  { %3230 = vmatprep.subr.bf16.mxu1 %v3799_v0 }
 0x701   :  { %v4099_v23 = vpop.f32.mrb[2].mxu1 }
 0x702   :  { %v2888_v25 = vpop.f32.mrb[3].mxu1 }
 0x709   :  { %v650_v26 = vpop.f32.mrb[4].mxu1 }
 0x70a   :  { %v661_v27 = vadd.f32 %v650_v26, %v4023_v17  ;;  %v2899_v28 = vpop.f32.mrb[5].mxu1  ;;  %v654_v29 = vadd.f32 %v650_v26, %v4028_v24 }
 0x70c   :  { %663 = vrot.lane.b32.xlu1 %v661_v27, %s3802_s9  ;;  %v2639_v30 = vmul.f32 -1.442695, %v654_v29 }
 0x70e   :  { %3412 = vpow2.f32 %v2639_v30 }
 0x718   :  { %v3413_v31 = vpop.eup %3412 }
 0x719   :  { %v658_v32 = vadd.f32 1.0, %v3413_v31 }
 0x71b   :  { %3414 = vrcp.f32 %v658_v32 }
 0x725   :  { %v3415_v33 = vpop.eup %3414 }
 0x726   :  { %v673_v41 = vsub.f32 1.0, %v3415_v33  ;;  %v679_v44 = vmul.f32 %v3415_v33, %v4051_v53 }
 0x77e   :  { %v664_v34 = vpop.permute.xlu1 %663 }
 0x77f   :  { %v666_v35 = vmul.f32 %v3415_v33, %v664_v34 }
 0x781   :  { %668 = vrot.lane.b32.xlu0 %v666_v35, %s3802_s9 }
 0x7f3   :  { %v669_v36 = vpop.permute.xlu0 %668 }
 0x7f4   :  { %v671_v37 = vadd.f32 %v669_v36, %v4028_v24 }
 0x7f6   :  { %3416 = vtanh.f32 %v671_v37 }
 0x800   :  { %v3417_v39 = vpop.eup %3416 }
 0x801   :  { %675 = vrot.lane.b32.xlu1 %v3417_v39, %s3803_s12 }
 0x873   :  { %v676_v42 = vpop.permute.xlu1 %675 }
 0x874   :  { %v678_v45 = vmul.f32 %v676_v42, %v673_v41 }
 0x876   :  { %v4108_v46 = vadd.f32 %v679_v44, %v678_v45 }
 0x878   :  { %682 = vrot.lane.b32.xlu0 %v4108_v46, %s3803_s12 }
 0x8ea   :  { %v683_v48 = vpop.permute.xlu0 %682 }
 0x8eb   :  { %v685_v49 = vsel %vm198_vm1, %v683_v48, %v4081_v21 }
 0x8ec   :  { %2917 = vmatmul.mubr.msk.f32.vlgmr.msra.gmra.mrb[4].mxu0 %vm402_vm2, %v685_v49 }
 0x8ed   :  { %3238 = vmatpush3.bf16.msra.mxu0 %v4034_v38  ;;  %2957 = vmatprep.mubr.msk.f32.mxu0 %vm3800_vm0, %v3801_v1 }
 0x8ee   :  { %3239 = vmatprep.subr.bf16.mxu0 %v3799_v0 }
 0x8f1   :  { %3241 = vmatpush3.bf16.msra.mxu0 %v4037_v40 }
 0x8f2   :  { %3242 = vmatprep.subr.bf16.mxu0 %v3799_v0 }
 0x8f5   :  { %3244 = vmatpush3.bf16.msra.mxu0 %v4041_v43 }
 0x8f6   :  { %3245 = vmatprep.subr.bf16.mxu0 %v3799_v0 }
 0x8f9   :  { %3247 = vmatpush3.bf16.msra.mxu0 %v4046_v47 }
 0x8fa   :  { %3260 = vmatprep.subr.bf16.mxu0 %v3799_v0 }
 0x9bf   :  { %v755_v50 = vpop.f32.mrb[4].mxu0 }
 0x9c0   :  { %v756_v51 = vadd.f32 %v4067_v57, %v755_v50  ;;  %v2918_v52 = vpop.f32.mrb[5].mxu0 }
 0x9c2   :  { %766 = vrot.lane.b32.xlu1 %v756_v51, %s3786_s23  ;;  %v2641_v53 = vmul.f32 -1.442695, %v756_v51 }
 0x9c4   :  { %3418 = vpow2.f32 %v2641_v53 }
 0x9ce   :  { %v3419_v54 = vpop.eup %3418 }
 0x9cf   :  { %v762_v55 = vadd.f32 1.0, %v3419_v54 }
 0x9d1   :  { %3420 = vrcp.f32 %v762_v55 }
 0x9db   :  { %v3421_v56 = vpop.eup %3420 }
 0x9dc   :  { %v776_v63 = vsub.f32 1.0, %v3421_v56  ;;  %v782_v3 = vmul.f32 %v3421_v56, %v4081_v21 }
 0xa34   :  { %v767_v58 = vpop.permute.xlu1 %766 }
 0xa35   :  { %v769_v59 = vmul.f32 %v3421_v56, %v767_v58 }
 0xa37   :  { %771 = vrot.lane.b32.xlu0 %v769_v59, %s3802_s9 }
 0xaa9   :  { %v772_v60 = vpop.permute.xlu0 %771 }
 0xaaa   :  { %v774_v61 = vadd.f32 %v772_v60, %v756_v51 }
 0xaac   :  { %3422 = vtanh.f32 %v774_v61 }
 0xab6   :  { %v3423_v62 = vpop.eup %3422 }
 0xab7   :  { %778 = vrot.lane.b32.xlu1 %v3423_v62, %s3803_s12 }
 0xb29   :  { %v779_v2 = vpop.permute.xlu1 %778 }
 0xb2a   :  { %v781_v4 = vmul.f32 %v779_v2, %v776_v63 }
 0xb2c   :  { %v4130_v5 = vadd.f32 %v782_v3, %v781_v4 }
 0xb2e   :  { %785 = vrot.lane.b32.xlu0 %v4130_v5, %s3803_s12 }
 0xba0   :  { %v786_v6 = vpop.permute.xlu0 %785 }
 0xba1   :  { %2928 = vmatmul.mubr.msk.f32.vlgmr.msra.gmra.mrb[6].mxu1 %vm198_vm1, %v786_v6 }
 0xba2   :  { %3232 = vmatpush3.bf16.msra.mxu1 %v4006_v9  ;;  %2938 = vmatprep.mubr.msk.f32.mxu1 %vm3800_vm0, %v3801_v1 }
 0xba3   :  { %3233 = vmatprep.subr.bf16.mxu1 %v3799_v0 }
 0xba6   :  { %3235 = vmatpush3.bf16.msra.mxu1 %v4010_v14 }
 0xba7   :  { %3248 = vmatprep.subr.bf16.mxu1 %v3799_v0 }
 0xba9   :  { %2939 = vmatmul.mubr.msk.f32.vlgmr.msra.gmra.mrb[8].mxu1 %vm198_vm1, %v683_v48 }
 0xbaa   :  { %3250 = vmatpush3.bf16.msra.mxu1 %v4072_v11  ;;  %2968 = vmatprep.mubr.msk.f32.mxu1 %vm3800_vm0, %v3801_v1 }
 0xbab   :  { %3251 = vmatprep.subr.bf16.mxu1 %v3799_v0 }
 0xbae   :  { %3253 = vmatpush3.bf16.msra.mxu1 %v4075_v13 }
 0xbaf   :  { %3254 = vmatprep.subr.bf16.mxu1 %v3799_v0 }
 0xc74   :  { %v4148_v7 = vpop.f32.mrb[6].mxu1 }
 0xc75   :  { %v2929_v8 = vpop.f32.mrb[7].mxu1 }
 0xc7c   :  { %v933_v10 = vpop.f32.mrb[8].mxu1 }
 0xc7d   :  { %v944_v12 = vadd.f32 %v933_v10, %v4023_v17  ;;  %v2940_v15 = vpop.f32.mrb[9].mxu1  ;;  %v937_v16 = vadd.f32 %v933_v10, %v4028_v24 }
 0xc7f   :  { %946 = vrot.lane.b32.xlu1 %v944_v12, %s3802_s9  ;;  %v2645_v18 = vmul.f32 -1.442695, %v937_v16 }
 0xc81   :  { %3424 = vpow2.f32 %v2645_v18 }
 0xc8b   :  { %v3425_v19 = vpop.eup %3424 }
 0xc8c   :  { %v941_v20 = vadd.f32 1.0, %v3425_v19 }
 0xc8e   :  { %3426 = vrcp.f32 %v941_v20 }
 0xc98   :  { %v3427_v21 = vpop.eup %3426 }
 0xc99   :  { %v956_v29 = vsub.f32 1.0, %v3427_v21  ;;  %v962_v31 = vmul.f32 %v3427_v21, %v4108_v46 }
 0xcf1   :  { %v947_v22 = vpop.permute.xlu1 %946 }
 0xcf2   :  { %v949_v25 = vmul.f32 %v3427_v21, %v947_v22 }
 0xcf4   :  { %951 = vrot.lane.b32.xlu0 %v949_v25, %s3802_s9 }
 0xd66   :  { %v952_v26 = vpop.permute.xlu0 %951 }
 0xd67   :  { %v954_v27 = vadd.f32 %v952_v26, %v4028_v24 }
 0xd69   :  { %3428 = vtanh.f32 %v954_v27 }
 0xd73   :  { %v3429_v28 = vpop.eup %3428 }
 0xd74   :  { %958 = vrot.lane.b32.xlu1 %v3429_v28, %s3803_s12 }
 0xde6   :  { %v959_v30 = vpop.permute.xlu1 %958 }
 0xde7   :  { %v961_v32 = vmul.f32 %v959_v30, %v956_v29 }
 0xde9   :  { %v4157_v33 = vadd.f32 %v962_v31, %v961_v32 }
 0xdeb   :  { %965 = vrot.lane.b32.xlu0 %v4157_v33, %s3803_s12 }
 0xe5d   :  { %v966_v34 = vpop.permute.xlu0 %965 }
 0xe5e   :  { %v968_v35 = vsel %vm198_vm1, %v966_v34, %v4130_v5 }
 0xe5f   :  { %2958 = vmatmul.mubr.msk.f32.vlgmr.msra.gmra.mrb[6].mxu0 %vm402_vm2, %v968_v35 }
 0xe60   :  { %3262 = vmatpush3.bf16.msra.mxu0 %v4034_v38  ;;  %2998 = vmatprep.mubr.msk.f32.mxu0 %vm3800_vm0, %v3801_v1 }
 0xe61   :  { %3263 = vmatprep.subr.bf16.mxu0 %v3799_v0 }
 0xe64   :  { %3265 = vmatpush3.bf16.msra.mxu0 %v4037_v40 }
 0xe65   :  { %3266 = vmatprep.subr.bf16.mxu0 %v3799_v0 }
 0xe68   :  { %3268 = vmatpush3.bf16.msra.mxu0 %v4041_v43 }
 0xe69   :  { %3269 = vmatprep.subr.bf16.mxu0 %v3799_v0 }
 0xe6c   :  { %3271 = vmatpush3.bf16.msra.mxu0 %v4046_v47 }
 0xe6d   :  { %3284 = vmatprep.subr.bf16.mxu0 %v3799_v0 }
 0xf32   :  { %v1038_v36 = vpop.f32.mrb[6].mxu0 }
 0xf33   :  { %v1039_v37 = vadd.f32 %v4067_v57, %v1038_v36  ;;  %v2959_v39 = vpop.f32.mrb[7].mxu0 }
 0xf35   :  { %1049 = vrot.lane.b32.xlu1 %v1039_v37, %s3786_s23  ;;  %v2647_v41 = vmul.f32 -1.442695, %v1039_v37 }
 0xf37   :  { %3430 = vpow2.f32 %v2647_v41 }
 0xf41   :  { %v3431_v42 = vpop.eup %3430 }
 0xf42   :  { %v1045_v44 = vadd.f32 1.0, %v3431_v42 }
 0xf44   :  { %3432 = vrcp.f32 %v1045_v44 }
 0xf4e   :  { %v3433_v45 = vpop.eup %3432 }
 0xf4f   :  { %v1059_v52 = vsub.f32 1.0, %v3433_v45  ;;  %v1065_v54 = vmul.f32 %v3433_v45, %v4130_v5 }
 0xfa7   :  { %v1050_v46 = vpop.permute.xlu1 %1049 }
 0xfa8   :  { %v1052_v48 = vmul.f32 %v3433_v45, %v1050_v46 }
 0xfaa   :  { %1054 = vrot.lane.b32.xlu0 %v1052_v48, %s3802_s9 }
0x101c   :  { %v1055_v49 = vpop.permute.xlu0 %1054 }
0x101d   :  { %v1057_v50 = vadd.f32 %v1055_v49, %v1039_v37 }
0x101f   :  { %3434 = vtanh.f32 %v1057_v50 }
0x1029   :  { %v3435_v51 = vpop.eup %3434 }
0x102a   :  { %1061 = vrot.lane.b32.xlu1 %v3435_v51, %s3803_s12 }
0x109c   :  { %v1062_v53 = vpop.permute.xlu1 %1061 }
0x109d   :  { %v1064_v55 = vmul.f32 %v1062_v53, %v1059_v52 }
0x109f   :  { %v4179_v56 = vadd.f32 %v1065_v54, %v1064_v55 }
0x10a1   :  { %1068 = vrot.lane.b32.xlu0 %v4179_v56, %s3803_s12 }
0x1113   :  { %v1069_v58 = vpop.permute.xlu0 %1068 }
0x1114   :  { %2969 = vmatmul.mubr.msk.f32.vlgmr.msra.gmra.mrb[10].mxu1 %vm198_vm1, %v1069_v58 }
0x1115   :  { %3256 = vmatpush3.bf16.msra.mxu1 %v4006_v9  ;;  %2979 = vmatprep.mubr.msk.f32.mxu1 %vm3800_vm0, %v3801_v1 }
0x1116   :  { %3257 = vmatprep.subr.bf16.mxu1 %v3799_v0 }
0x1119   :  { %3259 = vmatpush3.bf16.msra.mxu1 %v4010_v14 }
0x111a   :  { %3272 = vmatprep.subr.bf16.mxu1 %v3799_v0 }
0x111c   :  { %2980 = vmatmul.mubr.msk.f32.vlgmr.msra.gmra.mrb[12].mxu1 %vm198_vm1, %v966_v34 }
0x111d   :  { %3274 = vmatpush3.bf16.msra.mxu1 %v4072_v11  ;;  %3009 = vmatprep.mubr.msk.f32.mxu1 %vm3800_vm0, %v3801_v1 }
0x111e   :  { %3275 = vmatprep.subr.bf16.mxu1 %v3799_v0 }
0x1121   :  { %3277 = vmatpush3.bf16.msra.mxu1 %v4075_v13 }
0x1122   :  { %3278 = vmatprep.subr.bf16.mxu1 %v3799_v0 }
0x11e7   :  { %v4197_v59 = vpop.f32.mrb[10].mxu1 }
0x11e8   :  { %v2970_v60 = vpop.f32.mrb[11].mxu1 }
0x11ef   :  { %v1216_v61 = vpop.f32.mrb[12].mxu1 }
0x11f0   :  { %v1227_v62 = vadd.f32 %v1216_v61, %v4023_v17  ;;  %v2981_v63 = vpop.f32.mrb[13].mxu1  ;;  %v1220_v2 = vadd.f32 %v1216_v61, %v4028_v24 }
0x11f2   :  { %1229 = vrot.lane.b32.xlu1 %v1227_v62, %s3802_s9  ;;  %v2651_v3 = vmul.f32 -1.442695, %v1220_v2 }
0x11f4   :  { %3436 = vpow2.f32 %v2651_v3 }
0x11fe   :  { %v3437_v4 = vpop.eup %3436 }
0x11ff   :  { %v1224_v5 = vadd.f32 1.0, %v3437_v4 }
0x1201   :  { %3438 = vrcp.f32 %v1224_v5 }
0x120b   :  { %v3439_v6 = vpop.eup %3438 }
0x120c   :  { %v1239_v18 = vsub.f32 1.0, %v3439_v6  ;;  %v1245_v20 = vmul.f32 %v3439_v6, %v4157_v33 }
0x1264   :  { %v1230_v8 = vpop.permute.xlu1 %1229 }
0x1265   :  { %v1232_v10 = vmul.f32 %v3439_v6, %v1230_v8 }
0x1267   :  { %1234 = vrot.lane.b32.xlu0 %v1232_v10, %s3802_s9 }
0x12d9   :  { %v1235_v12 = vpop.permute.xlu0 %1234 }
0x12da   :  { %v1237_v15 = vadd.f32 %v1235_v12, %v4028_v24 }
0x12dc   :  { %3440 = vtanh.f32 %v1237_v15 }
0x12e6   :  { %v3441_v16 = vpop.eup %3440 }
0x12e7   :  { %1241 = vrot.lane.b32.xlu1 %v3441_v16, %s3803_s12 }
0x1359   :  { %v1242_v19 = vpop.permute.xlu1 %1241 }
0x135a   :  { %v1244_v21 = vmul.f32 %v1242_v19, %v1239_v18 }
0x135c   :  { %v4206_v22 = vadd.f32 %v1245_v20, %v1244_v21 }
0x135e   :  { %1248 = vrot.lane.b32.xlu0 %v4206_v22, %s3803_s12 }
0x13d0   :  { %v1249_v25 = vpop.permute.xlu0 %1248 }
0x13d1   :  { %v1251_v26 = vsel %vm198_vm1, %v1249_v25, %v4179_v56 }
0x13d2   :  { %2999 = vmatmul.mubr.msk.f32.vlgmr.msra.gmra.mrb[8].mxu0 %vm402_vm2, %v1251_v26 }
0x13d3   :  { %3286 = vmatpush3.bf16.msra.mxu0 %v4034_v38  ;;  %3039 = vmatprep.mubr.msk.f32.mxu0 %vm3800_vm0, %v3801_v1 }
0x13d4   :  { %3287 = vmatprep.subr.bf16.mxu0 %v3799_v0 }
0x13d7   :  { %3289 = vmatpush3.bf16.msra.mxu0 %v4037_v40 }
0x13d8   :  { %3290 = vmatprep.subr.bf16.mxu0 %v3799_v0 }
0x13db   :  { %3292 = vmatpush3.bf16.msra.mxu0 %v4041_v43 }
0x13dc   :  { %3293 = vmatprep.subr.bf16.mxu0 %v3799_v0 }
0x13df   :  { %3295 = vmatpush3.bf16.msra.mxu0 %v4046_v47 }
0x13e0   :  { %3308 = vmatprep.subr.bf16.mxu0 %v3799_v0 }
0x14a5   :  { %v1321_v27 = vpop.f32.mrb[8].mxu0 }
0x14a6   :  { %v1322_v28 = vadd.f32 %v4067_v57, %v1321_v27  ;;  %v3000_v29 = vpop.f32.mrb[9].mxu0 }
0x14a8   :  { %1332 = vrot.lane.b32.xlu1 %v1322_v28, %s3786_s23  ;;  %v2653_v30 = vmul.f32 -1.442695, %v1322_v28 }
0x14aa   :  { %3442 = vpow2.f32 %v2653_v30 }
0x14b4   :  { %v3443_v31 = vpop.eup %3442 }
0x14b5   :  { %v1328_v32 = vadd.f32 1.0, %v3443_v31 }
0x14b7   :  { %3444 = vrcp.f32 %v1328_v32 }
0x14c1   :  { %v3445_v33 = vpop.eup %3444 }
0x14c2   :  { %v1342_v41 = vsub.f32 1.0, %v3445_v33  ;;  %v1348_v44 = vmul.f32 %v3445_v33, %v4179_v56 }
0x151a   :  { %v1333_v34 = vpop.permute.xlu1 %1332 }
0x151b   :  { %v1335_v35 = vmul.f32 %v3445_v33, %v1333_v34 }
0x151d   :  { %1337 = vrot.lane.b32.xlu0 %v1335_v35, %s3802_s9 }
0x158f   :  { %v1338_v36 = vpop.permute.xlu0 %1337 }
0x1590   :  { %v1340_v37 = vadd.f32 %v1338_v36, %v1322_v28 }
0x1592   :  { %3446 = vtanh.f32 %v1340_v37 }
0x159c   :  { %v3447_v39 = vpop.eup %3446 }
0x159d   :  { %1344 = vrot.lane.b32.xlu1 %v3447_v39, %s3803_s12 }
0x160f   :  { %v1345_v42 = vpop.permute.xlu1 %1344 }
0x1610   :  { %v1347_v45 = vmul.f32 %v1345_v42, %v1342_v41 }
0x1612   :  { %v4228_v46 = vadd.f32 %v1348_v44, %v1347_v45 }
0x1614   :  { %1351 = vrot.lane.b32.xlu0 %v4228_v46, %s3803_s12 }
0x1686   :  { %v1352_v48 = vpop.permute.xlu0 %1351 }
0x1687   :  { %3010 = vmatmul.mubr.msk.f32.vlgmr.msra.gmra.mrb[14].mxu1 %vm198_vm1, %v1352_v48 }
0x1688   :  { %3280 = vmatpush3.bf16.msra.mxu1 %v4006_v9  ;;  %3020 = vmatprep.mubr.msk.f32.mxu1 %vm3800_vm0, %v3801_v1 }
0x1689   :  { %3281 = vmatprep.subr.bf16.mxu1 %v3799_v0 }
0x168c   :  { %3283 = vmatpush3.bf16.msra.mxu1 %v4010_v14 }
0x168d   :  { %3296 = vmatprep.subr.bf16.mxu1 %v3799_v0 }
0x168f   :  { %3021 = vmatmul.mubr.msk.f32.vlgmr.msra.gmra.mrb[16].mxu1 %vm198_vm1, %v1249_v25 }
0x1690   :  { %3298 = vmatpush3.bf16.msra.mxu1 %v4072_v11  ;;  %3050 = vmatprep.mubr.msk.f32.mxu1 %vm3800_vm0, %v3801_v1 }
0x1691   :  { %3299 = vmatprep.subr.bf16.mxu1 %v3799_v0 }
0x1694   :  { %3301 = vmatpush3.bf16.msra.mxu1 %v4075_v13 }
0x1695   :  { %3302 = vmatprep.subr.bf16.mxu1 %v3799_v0 }
0x175a   :  { %v4246_v49 = vpop.f32.mrb[14].mxu1 }
0x175b   :  { %v3011_v50 = vpop.f32.mrb[15].mxu1 }
0x1762   :  { %v1499_v51 = vpop.f32.mrb[16].mxu1 }
0x1763   :  { %v1510_v52 = vadd.f32 %v1499_v51, %v4023_v17  ;;  %v3022_v53 = vpop.f32.mrb[17].mxu1  ;;  %v1503_v54 = vadd.f32 %v1499_v51, %v4028_v24 }
0x1765   :  { %1512 = vrot.lane.b32.xlu1 %v1510_v52, %s3802_s9  ;;  %v2657_v55 = vmul.f32 -1.442695, %v1503_v54 }
0x1767   :  { %3448 = vpow2.f32 %v2657_v55 }
0x1771   :  { %v3449_v56 = vpop.eup %3448 }
0x1772   :  { %v1507_v58 = vadd.f32 1.0, %v3449_v56 }
0x1774   :  { %3450 = vrcp.f32 %v1507_v58 }
0x177e   :  { %v3451_v60 = vpop.eup %3450 }
0x177f   :  { %v1522_v4 = vsub.f32 1.0, %v3451_v60  ;;  %v1528_v6 = vmul.f32 %v3451_v60, %v4206_v22 }
0x17d7   :  { %v1513_v61 = vpop.permute.xlu1 %1512 }
0x17d8   :  { %v1515_v62 = vmul.f32 %v3451_v60, %v1513_v61 }
0x17da   :  { %1517 = vrot.lane.b32.xlu0 %v1515_v62, %s3802_s9 }
0x184c   :  { %v1518_v63 = vpop.permute.xlu0 %1517 }
0x184d   :  { %v1520_v2 = vadd.f32 %v1518_v63, %v4028_v24 }
0x184f   :  { %3452 = vtanh.f32 %v1520_v2 }
0x1859   :  { %v3453_v3 = vpop.eup %3452 }
0x185a   :  { %1524 = vrot.lane.b32.xlu1 %v3453_v3, %s3803_s12 }
0x18cc   :  { %v1525_v5 = vpop.permute.xlu1 %1524 }
0x18cd   :  { %v1527_v8 = vmul.f32 %v1525_v5, %v1522_v4 }
0x18cf   :  { %v4255_v10 = vadd.f32 %v1528_v6, %v1527_v8 }
0x18d1   :  { %1531 = vrot.lane.b32.xlu0 %v4255_v10, %s3803_s12 }
0x1943   :  { %v1532_v12 = vpop.permute.xlu0 %1531 }
0x1944   :  { %v1534_v15 = vsel %vm198_vm1, %v1532_v12, %v4228_v46 }
0x1945   :  { %3040 = vmatmul.mubr.msk.f32.vlgmr.msra.gmra.mrb[10].mxu0 %vm402_vm2, %v1534_v15 }
0x1946   :  { %3310 = vmatpush3.bf16.msra.mxu0 %v4034_v38  ;;  %3080 = vmatprep.mubr.msk.f32.mxu0 %vm3800_vm0, %v3801_v1 }
0x1947   :  { %3311 = vmatprep.subr.bf16.mxu0 %v3799_v0 }
0x194a   :  { %3313 = vmatpush3.bf16.msra.mxu0 %v4037_v40 }
0x194b   :  { %3314 = vmatprep.subr.bf16.mxu0 %v3799_v0 }
0x194e   :  { %3316 = vmatpush3.bf16.msra.mxu0 %v4041_v43 }
0x194f   :  { %3317 = vmatprep.subr.bf16.mxu0 %v3799_v0 }
0x1952   :  { %3319 = vmatpush3.bf16.msra.mxu0 %v4046_v47 }
0x1953   :  { %3332 = vmatprep.subr.bf16.mxu0 %v3799_v0 }
0x1a18   :  { %v1604_v16 = vpop.f32.mrb[10].mxu0 }
0x1a19   :  { %v1605_v18 = vadd.f32 %v4067_v57, %v1604_v16  ;;  %v3041_v19 = vpop.f32.mrb[11].mxu0 }
0x1a1b   :  { %1615 = vrot.lane.b32.xlu1 %v1605_v18, %s3786_s23  ;;  %v2659_v20 = vmul.f32 -1.442695, %v1605_v18 }
0x1a1d   :  { %3454 = vpow2.f32 %v2659_v20 }
0x1a27   :  { %v3455_v21 = vpop.eup %3454 }
0x1a28   :  { %v1611_v22 = vadd.f32 1.0, %v3455_v21 }
0x1a2a   :  { %3456 = vrcp.f32 %v1611_v22 }
0x1a34   :  { %v3457_v25 = vpop.eup %3456 }
0x1a35   :  { %v1625_v31 = vsub.f32 1.0, %v3457_v25  ;;  %v1631_v33 = vmul.f32 %v3457_v25, %v4228_v46 }
0x1a8d   :  { %v1616_v26 = vpop.permute.xlu1 %1615 }
0x1a8e   :  { %v1618_v27 = vmul.f32 %v3457_v25, %v1616_v26 }
0x1a90   :  { %1620 = vrot.lane.b32.xlu0 %v1618_v27, %s3802_s9 }
0x1b02   :  { %v1621_v28 = vpop.permute.xlu0 %1620 }
0x1b03   :  { %v1623_v29 = vadd.f32 %v1621_v28, %v1605_v18 }
0x1b05   :  { %3458 = vtanh.f32 %v1623_v29 }
0x1b0f   :  { %v3459_v30 = vpop.eup %3458 }
0x1b10   :  { %1627 = vrot.lane.b32.xlu1 %v3459_v30, %s3803_s12 }
0x1b82   :  { %v1628_v32 = vpop.permute.xlu1 %1627 }
0x1b83   :  { %v1630_v34 = vmul.f32 %v1628_v32, %v1625_v31 }
0x1b85   :  { %v4277_v35 = vadd.f32 %v1631_v33, %v1630_v34 }
0x1b87   :  { %1634 = vrot.lane.b32.xlu0 %v4277_v35, %s3803_s12 }
0x1bf9   :  { %v1635_v36 = vpop.permute.xlu0 %1634 }
0x1bfa   :  { %3051 = vmatmul.mubr.msk.f32.vlgmr.msra.gmra.mrb[18].mxu1 %vm198_vm1, %v1635_v36 }
0x1bfb   :  { %3304 = vmatpush3.bf16.msra.mxu1 %v4006_v9  ;;  %3061 = vmatprep.mubr.msk.f32.mxu1 %vm3800_vm0, %v3801_v1 }
0x1bfc   :  { %3305 = vmatprep.subr.bf16.mxu1 %v3799_v0 }
0x1bff   :  { %3307 = vmatpush3.bf16.msra.mxu1 %v4010_v14 }
0x1c00   :  { %3320 = vmatprep.subr.bf16.mxu1 %v3799_v0 }
0x1c02   :  { %3062 = vmatmul.mubr.msk.f32.vlgmr.msra.gmra.mrb[20].mxu1 %vm198_vm1, %v1532_v12 }
0x1c03   :  { %3322 = vmatpush3.bf16.msra.mxu1 %v4072_v11  ;;  %3091 = vmatprep.mubr.msk.f32.mxu1 %vm3800_vm0, %v3801_v1 }
0x1c04   :  { %3323 = vmatprep.subr.bf16.mxu1 %v3799_v0 }
0x1c07   :  { %3325 = vmatpush3.bf16.msra.mxu1 %v4075_v13 }
0x1c08   :  { %3326 = vmatprep.subr.bf16.mxu1 %v3799_v0 }
0x1ccd   :  { %v4295_v37 = vpop.f32.mrb[18].mxu1 }
0x1cce   :  { %v3052_v39 = vpop.f32.mrb[19].mxu1 }
0x1cd5   :  { %v1782_v41 = vpop.f32.mrb[20].mxu1 }
0x1cd6   :  { %v1793_v42 = vadd.f32 %v1782_v41, %v4023_v17  ;;  %v3063_v44 = vpop.f32.mrb[21].mxu1  ;;  %v1786_v45 = vadd.f32 %v1782_v41, %v4028_v24 }
0x1cd8   :  { %1795 = vrot.lane.b32.xlu1 %v1793_v42, %s3802_s9  ;;  %v2663_v46 = vmul.f32 -1.442695, %v1786_v45 }
0x1cda   :  { %3460 = vpow2.f32 %v2663_v46 }
0x1ce4   :  { %v3461_v48 = vpop.eup %3460 }
0x1ce5   :  { %v1790_v50 = vadd.f32 1.0, %v3461_v48 }
0x1ce7   :  { %3462 = vrcp.f32 %v1790_v50 }
0x1cf1   :  { %v3463_v51 = vpop.eup %3462 }
0x1cf2   :  { %v1805_v58 = vsub.f32 1.0, %v3463_v51  ;;  %v1811_v61 = vmul.f32 %v3463_v51, %v4255_v10 }
0x1d4a   :  { %v1796_v52 = vpop.permute.xlu1 %1795 }
0x1d4b   :  { %v1798_v53 = vmul.f32 %v3463_v51, %v1796_v52 }
0x1d4d   :  { %1800 = vrot.lane.b32.xlu0 %v1798_v53, %s3802_s9 }
0x1dbf   :  { %v1801_v54 = vpop.permute.xlu0 %1800 }
0x1dc0   :  { %v1803_v55 = vadd.f32 %v1801_v54, %v4028_v24 }
0x1dc2   :  { %3464 = vtanh.f32 %v1803_v55 }
0x1dcc   :  { %v3465_v56 = vpop.eup %3464 }
0x1dcd   :  { %1807 = vrot.lane.b32.xlu1 %v3465_v56, %s3803_s12 }
0x1e3f   :  { %v1808_v60 = vpop.permute.xlu1 %1807 }
0x1e40   :  { %v1810_v62 = vmul.f32 %v1808_v60, %v1805_v58 }
0x1e42   :  { %v4304_v63 = vadd.f32 %v1811_v61, %v1810_v62 }
0x1e44   :  { %1814 = vrot.lane.b32.xlu0 %v4304_v63, %s3803_s12 }
0x1eb6   :  { %v1815_v2 = vpop.permute.xlu0 %1814 }
0x1eb7   :  { %v1817_v3 = vsel %vm198_vm1, %v1815_v2, %v4277_v35 }
0x1eb8   :  { %3081 = vmatmul.mubr.msk.f32.vlgmr.msra.gmra.mrb[12].mxu0 %vm402_vm2, %v1817_v3 }
0x1eb9   :  { %3334 = vmatpush3.bf16.msra.mxu0 %v4034_v38  ;;  %3121 = vmatprep.mubr.msk.f32.mxu0 %vm3800_vm0, %v3801_v1 }
0x1eba   :  { %3335 = vmatprep.subr.bf16.mxu0 %v3799_v0 }
0x1ebd   :  { %3337 = vmatpush3.bf16.msra.mxu0 %v4037_v40 }
0x1ebe   :  { %3338 = vmatprep.subr.bf16.mxu0 %v3799_v0 }
0x1ec1   :  { %3340 = vmatpush3.bf16.msra.mxu0 %v4041_v43 }
0x1ec2   :  { %3341 = vmatprep.subr.bf16.mxu0 %v3799_v0 }
0x1ec5   :  { %3343 = vmatpush3.bf16.msra.mxu0 %v4046_v47 }
0x1ec6   :  { %3356 = vmatprep.subr.bf16.mxu0 %v3799_v0 }
0x1f8b   :  { %v1887_v4 = vpop.f32.mrb[12].mxu0 }
0x1f8c   :  { %v1888_v5 = vadd.f32 %v4067_v57, %v1887_v4  ;;  %v3082_v6 = vpop.f32.mrb[13].mxu0 }
0x1f8e   :  { %1898 = vrot.lane.b32.xlu1 %v1888_v5, %s3786_s23  ;;  %v2665_v8 = vmul.f32 -1.442695, %v1888_v5 }
0x1f90   :  { %3466 = vpow2.f32 %v2665_v8 }
0x1f9a   :  { %v3467_v10 = vpop.eup %3466 }
0x1f9b   :  { %v1894_v12 = vadd.f32 1.0, %v3467_v10 }
0x1f9d   :  { %3468 = vrcp.f32 %v1894_v12 }
0x1fa7   :  { %v3469_v15 = vpop.eup %3468 }
0x1fa8   :  { %v1908_v22 = vsub.f32 1.0, %v3469_v15  ;;  %v1914_v26 = vmul.f32 %v3469_v15, %v4277_v35 }
0x2000   :  { %v1899_v16 = vpop.permute.xlu1 %1898 }
0x2001   :  { %v1901_v18 = vmul.f32 %v3469_v15, %v1899_v16 }
0x2003   :  { %1903 = vrot.lane.b32.xlu0 %v1901_v18, %s3802_s9 }
0x2075   :  { %v1904_v19 = vpop.permute.xlu0 %1903 }
0x2076   :  { %v1906_v20 = vadd.f32 %v1904_v19, %v1888_v5 }
0x2078   :  { %3470 = vtanh.f32 %v1906_v20 }
0x2082   :  { %v3471_v21 = vpop.eup %3470 }
0x2083   :  { %1910 = vrot.lane.b32.xlu1 %v3471_v21, %s3803_s12 }
0x20f5   :  { %v1911_v25 = vpop.permute.xlu1 %1910 }
0x20f6   :  { %v1913_v27 = vmul.f32 %v1911_v25, %v1908_v22 }
0x20f8   :  { %v4326_v28 = vadd.f32 %v1914_v26, %v1913_v27 }
0x20fa   :  { %1917 = vrot.lane.b32.xlu0 %v4326_v28, %s3803_s12 }
0x216c   :  { %v1918_v29 = vpop.permute.xlu0 %1917 }
0x216d   :  { %3092 = vmatmul.mubr.msk.f32.vlgmr.msra.gmra.mrb[22].mxu1 %vm198_vm1, %v1918_v29 }
0x216e   :  { %3328 = vmatpush3.bf16.msra.mxu1 %v4006_v9  ;;  %3102 = vmatprep.mubr.msk.f32.mxu1 %vm3800_vm0, %v3801_v1 }
0x216f   :  { %3329 = vmatprep.subr.bf16.mxu1 %v3799_v0 }
0x2172   :  { %3331 = vmatpush3.bf16.msra.mxu1 %v4010_v14 }
0x2173   :  { %3344 = vmatprep.subr.bf16.mxu1 %v3799_v0 }
0x2175   :  { %3103 = vmatmul.mubr.msk.f32.vlgmr.msra.gmra.mrb[24].mxu1 %vm198_vm1, %v1815_v2 }
0x2176   :  { %3346 = vmatpush3.bf16.msra.mxu1 %v4072_v11  ;;  %3132 = vmatprep.mubr.msk.f32.mxu1 %vm3800_vm0, %v3801_v1 }
0x2177   :  { %3347 = vmatprep.subr.bf16.mxu1 %v3799_v0 }
0x217a   :  { %3349 = vmatpush3.bf16.msra.mxu1 %v4075_v13 }
0x217b   :  { %3350 = vmatprep.subr.bf16.mxu1 %v3799_v0 }
0x2240   :  { %v4344_v30 = vpop.f32.mrb[22].mxu1 }
0x2241   :  { %v3093_v31 = vpop.f32.mrb[23].mxu1 }
0x2248   :  { %v2065_v32 = vpop.f32.mrb[24].mxu1 }
0x2249   :  { %v2076_v33 = vadd.f32 %v2065_v32, %v4023_v17  ;;  %v3104_v34 = vpop.f32.mrb[25].mxu1  ;;  %v2069_v35 = vadd.f32 %v2065_v32, %v4028_v24 }
0x224b   :  { %2078 = vrot.lane.b32.xlu1 %v2076_v33, %s3802_s9  ;;  %v2669_v36 = vmul.f32 -1.442695, %v2069_v35 }
0x224d   :  { %3472 = vpow2.f32 %v2669_v36 }
0x2257   :  { %v3473_v39 = vpop.eup %3472 }
0x2258   :  { %v2073_v41 = vadd.f32 1.0, %v3473_v39 }
0x225a   :  { %3474 = vrcp.f32 %v2073_v41 }
0x2264   :  { %v3475_v42 = vpop.eup %3474 }
0x2265   :  { %v2088_v51 = vsub.f32 1.0, %v3475_v42  ;;  %v2094_v53 = vmul.f32 %v3475_v42, %v4304_v63 }
0x22bd   :  { %v2079_v44 = vpop.permute.xlu1 %2078 }
0x22be   :  { %v2081_v45 = vmul.f32 %v3475_v42, %v2079_v44 }
0x22c0   :  { %2083 = vrot.lane.b32.xlu0 %v2081_v45, %s3802_s9 }
0x2332   :  { %v2084_v46 = vpop.permute.xlu0 %2083 }
0x2333   :  { %v2086_v48 = vadd.f32 %v2084_v46, %v4028_v24 }
0x2335   :  { %3476 = vtanh.f32 %v2086_v48 }
0x233f   :  { %v3477_v50 = vpop.eup %3476 }
0x2340   :  { %2090 = vrot.lane.b32.xlu1 %v3477_v50, %s3803_s12  ;;  %v4406_v50 = vld [vmem:[#allocation17] ss:$0 sm:$0xff] }
0x23b2   :  { %v2091_v52 = vpop.permute.xlu1 %2090 }
0x23b3   :  { %v2093_v54 = vmul.f32 %v2091_v52, %v2088_v51  ;;  %v856_v51 = vadd.f32 %v4406_v50, %v4148_v7 }
0x23b5   :  { %v4353_v55 = vadd.f32 %v2094_v53, %v2093_v54  ;;  %v2643_v52 = vmul.f32 -1.442695, %v856_v51  ;;  %v1422_v53 = vadd.f32 %v4406_v50, %v4246_v49 }
0x23b7   :  { %2097 = vrot.lane.b32.xlu0 %v4353_v55, %s3803_s12  ;;  %v2655_v54 = vmul.f32 -1.442695, %v1422_v53 }
0x2429   :  { %v2098_v56 = vpop.permute.xlu0 %2097 }
0x242a   :  { %v2100_v58 = vsel %vm198_vm1, %v2098_v56, %v4326_v28 }
0x242b   :  { %3122 = vmatmul.mubr.msk.f32.vlgmr.msra.gmra.mrb[14].mxu0 %vm402_vm2, %v2100_v58 }
0x242c   :  { %3358 = vmatpush3.bf16.msra.mxu0 %v4034_v38  ;;  %3162 = vmatprep.mubr.msk.f32.mxu0 %vm3800_vm0, %v3801_v1 }
0x242d   :  { %3359 = vmatprep.subr.bf16.mxu0 %v3799_v0 }
0x2430   :  { %3361 = vmatpush3.bf16.msra.mxu0 %v4037_v40 }
0x2431   :  { %3362 = vmatprep.subr.bf16.mxu0 %v3799_v0 }
0x2434   :  { %3364 = vmatpush3.bf16.msra.mxu0 %v4041_v43 }
0x2435   :  { %3365 = vmatprep.subr.bf16.mxu0 %v3799_v0 }
0x2438   :  { %3367 = vmatpush3.bf16.msra.mxu0 %v4046_v47 }
0x24fe   :  { %v2170_v60 = vpop.f32.mrb[14].mxu0 }
0x24ff   :  { %v2171_v61 = vadd.f32 %v4067_v57, %v2170_v60  ;;  %v3123_v62 = vpop.f32.mrb[15].mxu0 }
0x2501   :  { %2181 = vrot.lane.b32.xlu1 %v2171_v61, %s3786_s23  ;;  %v2671_v38 = vmul.f32 -1.442695, %v2171_v61 }
0x2503   :  { %3478 = vpow2.f32 %v2671_v38 }
0x250d   :  { %v3479_v63 = vpop.eup %3478 }
0x250e   :  { %v2177_v2 = vadd.f32 1.0, %v3479_v63 }
0x2510   :  { %3480 = vrcp.f32 %v2177_v2 }
0x251a   :  { %v3481_v40 = vpop.eup %3480 }
0x251b   :  { %v2191_v57 = vsub.f32 1.0, %v3481_v40  ;;  %v2197_v8 = vmul.f32 %v3481_v40, %v4326_v28 }
0x2573   :  { %v2182_v3 = vpop.permute.xlu1 %2181 }
0x2574   :  { %v2184_v4 = vmul.f32 %v3481_v40, %v2182_v3 }
0x2576   :  { %2186 = vrot.lane.b32.xlu0 %v2184_v4, %s3802_s9  ;;  %v1139_v4 = vadd.f32 %v4406_v50, %v4197_v59 }
0x25e8   :  { %v2187_v43 = vpop.permute.xlu0 %2186 }
0x25e9   :  { %v2189_v5 = vadd.f32 %v2187_v43, %v2171_v61  ;;  %v2649_v43 = vmul.f32 -1.442695, %v1139_v4 }
0x25eb   :  { %3482 = vtanh.f32 %v2189_v5  ;;  %v1705_v5 = vadd.f32 %v4406_v50, %v4295_v37 }
0x25f5   :  { %v3483_v47 = vpop.eup %3482 }
0x25f6   :  { %2193 = vrot.lane.b32.xlu1 %v3483_v47, %s3803_s12  ;;  %v2661_v47 = vmul.f32 -1.442695, %v1705_v5 }
0x2668   :  { %v2194_v6 = vpop.permute.xlu1 %2193 }
0x2669   :  { %v2196_v10 = vmul.f32 %v2194_v6, %v2191_v57 }
0x266b   :  { %v4374_v12 = vadd.f32 %v2197_v8, %v2196_v10 }
0x266d   :  { %2200 = vrot.lane.b32.xlu0 %v4374_v12, %s3803_s12 }
0x26df   :  { %v2201_v15 = vpop.permute.xlu0 %2200 }
0x26e0   :  { %3133 = vmatmul.mubr.msk.f32.vlgmr.msra.gmra.mrb[26].mxu1 %vm198_vm1, %v2201_v15 }
0x26e1   :  { %3352 = vmatpush3.bf16.msra.mxu1 %v4006_v9  ;;  %3143 = vmatprep.mubr.msk.f32.mxu1 %vm3800_vm0, %v3801_v1 }
0x26e2   :  { %3353 = vmatprep.subr.bf16.mxu1 %v3799_v0 }
0x26e5   :  { %3355 = vmatpush3.bf16.msra.mxu1 %v4010_v14 }
0x26e6   :  { %3368 = vmatprep.subr.bf16.mxu1 %v3799_v0 }
0x26e8   :  { %3144 = vmatmul.mubr.msk.f32.vlgmr.msra.gmra.mrb[28].mxu1 %vm198_vm1, %v2098_v56 }
0x26e9   :  { %3370 = vmatpush3.bf16.msra.mxu1 %v4072_v11  ;;  %3173 = vmatprep.mubr.msk.f32.mxu1 %vm3800_vm0, %v3801_v1 }
0x26ea   :  { %3371 = vmatprep.subr.bf16.mxu1 %v3799_v0 }
0x26ed   :  { %3373 = vmatpush3.bf16.msra.mxu1 %v4075_v13 }
0x27b3   :  { %v4391_v9 = vpop.f32.mrb[26].mxu1 }
0x27b4   :  { %v3134_v16 = vpop.f32.mrb[27].mxu1  ;;  %v2271_v57 = vadd.f32 %v4406_v50, %v4391_v9 }
0x27b6   :  { %v2673_v6 = vmul.f32 -1.442695, %v2271_v57 }
0x27bb   :  { %v2348_v18 = vpop.f32.mrb[28].mxu1 }
0x27bc   :  { %v2359_v19 = vadd.f32 %v2348_v18, %v4023_v17  ;;  %v3145_v14 = vpop.f32.mrb[29].mxu1  ;;  %v2352_v20 = vadd.f32 %v2348_v18, %v4028_v24 }
0x27be   :  { %2361 = vrot.lane.b32.xlu1 %v2359_v19, %s3802_s9  ;;  %v2675_v21 = vmul.f32 -1.442695, %v2352_v20 }
0x27c0   :  { %3484 = vpow2.f32 %v2675_v21 }
0x27ca   :  { %v3485_v11 = vpop.eup %3484 }
0x27cb   :  { %v2356_v22 = vadd.f32 1.0, %v3485_v11 }
0x27cd   :  { %3486 = vrcp.f32 %v2356_v22 }
0x27d7   :  { %v3487_v1 = vpop.eup %3486 }
0x27d8   :  { %v2371_v27 = vsub.f32 1.0, %v3487_v1  ;;  %v2377_v29 = vmul.f32 %v3487_v1, %v4353_v55  ;;  %v1988_v55 = vadd.f32 %v4406_v50, %v4344_v30 }
0x27da   :  { %v2667_v56 = vmul.f32 -1.442695, %v1988_v55 }
0x2830   :  { %v2362_v0 = vpop.permute.xlu1 %2361 }
0x2831   :  { %v2364_v25 = vmul.f32 %v3487_v1, %v2362_v0 }
0x2833   :  { %2366 = vrot.lane.b32.xlu0 %v2364_v25, %s3802_s9 }
0x28a5   :  { %v2367_v13 = vpop.permute.xlu0 %2366 }
0x28a6   :  { %v2369_v26 = vadd.f32 %v2367_v13, %v4028_v24  ;;  %v3528_v24 = vld [vmem:[#allocation14] ss:$0 sm:$0xff] }
0x28a8   :  { %3488 = vtanh.f32 %v2369_v26 }
0x28b2   :  { %v3489_v17 = vpop.eup %3488 }
0x28b3   :  { %2373 = vrot.lane.b32.xlu1 %v3489_v17, %s3803_s12 }
0x2925   :  { %v2374_v28 = vpop.permute.xlu1 %2373 }
0x2926   :  { %v2376_v31 = vmul.f32 %v2374_v28, %v2371_v27  ;;  %v573_v28 = vadd.f32 %v4406_v50, %v4099_v23 }
0x2928   :  { %v2378_v32 = vadd.f32 %v2377_v29, %v2376_v31  ;;  %v2637_v29 = vmul.f32 -1.442695, %v573_v28 }
0x292a   :  { %2380 = vrot.lane.b32.xlu0 %v2378_v32, %s3803_s12 }
0x299c   :  { %v2381_v33 = vpop.permute.xlu0 %2380 }
0x299d   :  { %v2383_v34 = vsel %vm198_vm1, %v2381_v33, %v4374_v12 }
0x299e   :  { %3163 = vmatmul.mubr.msk.f32.vlgmr.msra.gmra.mrb[16].mxu0 %vm402_vm2, %v2383_v34 }
0x2a71   :  { %v2453_v35 = vpop.f32.mrb[16].mxu0 }
0x2a72   :  { %v2454_v36 = vadd.f32 %v3528_v24, %v2453_v35  ;;  %v3164_v39 = vpop.f32.mrb[17].mxu0 }
0x2a74   :  { %2464 = vrot.lane.b32.xlu1 %v2454_v36, %s3786_s23  ;;  %v2677_v41 = vmul.f32 -1.442695, %v2454_v36  ;;  %s3804_s23 = smov 4  }
0x2a76   :  { %3490 = vpow2.f32 %v2677_v41 }
0x2a80   :  { %v3491_v42 = vpop.eup %3490 }
0x2a81   :  { %v2460_v44 = vadd.f32 1.0, %v3491_v42 }
0x2a83   :  { %3492 = vrcp.f32 %v2460_v44 }
0x2a84   :  { %3494 = vpow2.f32 %v2643_v52 }
0x2a85   :  { %3496 = vpow2.f32 %v2655_v54 }
0x2a86   :  { %3498 = vpow2.f32 %v2667_v56 }
0x2a8d   :  { %v3493_v45 = vpop.eup %3492 }
0x2a8e   :  { %v3495_v58 = vpop.eup %3494  ;;  %v2474_v19 = vsub.f32 1.0, %v3493_v45  ;;  %v2480_v14 = vmul.f32 %v3493_v45, %v4374_v12 }
0x2a8f   :  { %v862_v62 = vadd.f32 1.0, %v3495_v58  ;;  %v3497_v38 = vpop.eup %3496 }
0x2a90   :  { %v1428_v7 = vadd.f32 1.0, %v3497_v38  ;;  %v3499_v63 = vpop.eup %3498 }
0x2a91   :  { %v1994_v2 = vadd.f32 1.0, %v3499_v63 }
0x2ae6   :  { %v2465_v46 = vpop.permute.xlu1 %2464 }
0x2ae7   :  { %v2467_v48 = vmul.f32 %v3493_v45, %v2465_v46 }
0x2ae9   :  { %2469 = vrot.lane.b32.xlu0 %v2467_v48, %s3802_s9 }
0x2b5b   :  { %v2470_v60 = vpop.permute.xlu0 %2469 }
0x2b5c   :  { %v2472_v61 = vadd.f32 %v2470_v60, %v2454_v36 }
0x2b5e   :  { %3500 = vtanh.f32 %v2472_v61 }
0x2b5f   :  { %3502 = vrcp.f32 %v862_v62 }
0x2b60   :  { %3504 = vrcp.f32 %v1428_v7 }
0x2b61   :  { %3506 = vrcp.f32 %v1994_v2 }
0x2b62   :  { %3508 = vpow2.f32 %v2649_v43 }
0x2b63   :  { %3510 = vpow2.f32 %v2661_v47 }
0x2b64   :  { %3512 = vpow2.f32 %v2673_v6 }
0x2b68   :  { %v3501_v49 = vpop.eup %3500 }
0x2b69   :  { %2476 = vrot.lane.b32.xlu1 %v3501_v49, %s3803_s12  ;;  %v3503_v40 = vpop.eup %3502 }
0x2b6a   :  { %v3505_v30 = vpop.eup %3504 }
0x2b6b   :  { %v3507_v3 = vpop.eup %3506 }
0x2b6c   :  { %v3509_v8 = vpop.eup %3508 }
0x2b6d   :  { %2564 = vrot.lane.b32.xlu1 %v3503_v40, %s3804_s23  ;;  %v1145_v10 = vadd.f32 1.0, %v3509_v8  ;;  %v3511_v15 = vpop.eup %3510 }
0x2b6e   :  { %v1711_v16 = vadd.f32 1.0, %v3511_v15  ;;  %v3513_v18 = vpop.eup %3512 }
0x2b6f   :  { %3514 = vrcp.f32 %v1145_v10  ;;  %v2277_v37 = vadd.f32 1.0, %v3513_v18 }
0x2b70   :  { %3516 = vrcp.f32 %v1711_v16 }
0x2b71   :  { %2572 = vrot.lane.b32.xlu1 %v3505_v30, %s3805_s4  ;;  %3518 = vrcp.f32 %v2277_v37 }
0x2b75   :  { %2580 = vrot.lane.b32.xlu1 %v3507_v3, %s3806_s24 }
0x2b79   :  { %v3515_v9 = vpop.eup %3514 }
0x2b7a   :  { %v3517_v11 = vpop.eup %3516 }
0x2b7b   :  { %v3519_v22 = vpop.eup %3518 }
0x2bdb   :  { %v2477_v59 = vpop.permute.xlu1 %2476 }
0x2bdc   :  { %v2479_v20 = vmul.f32 %v2477_v59, %v2474_v19 }
0x2bde   :  { %v2481_v21 = vadd.f32 %v2480_v14, %v2479_v20 }
0x2bdf   :  { %v2565_v33 = vpop.permute.xlu1 %2564 }
0x2be0   :  { %2483 = vrot.lane.b32.xlu0 %v2481_v21, %s3803_s12 }
0x2be3   :  { %v2573_v24 = vpop.permute.xlu1 %2572 }
0x2be4   :  { %2568 = vrot.lane.b32.xlu0 %v3515_v9, %s3791_s19  ;;  %s3809_s19 = smov 28  }
0x2be7   :  { %v2581_v44 = vpop.permute.xlu1 %2580 }
0x2be8   :  { %2576 = vrot.lane.b32.xlu0 %v3517_v11, %s3807_s13 }
0x2bec   :  { %2584 = vrot.lane.b32.xlu0 %v3519_v22, %s3808_s3 }
0x2c52   :  { %v2484_v1 = vpop.permute.xlu0 %2483 }
0x2c53   :  { %3174 = vmatmul.mubr.msk.f32.vlgmr.msra.gmra.mrb[30].mxu1 %vm198_vm1, %v2484_v1 }
0x2c56   :  { %v2569_v34 = vpop.permute.xlu0 %2568 }
0x2c5a   :  { %v2577_v39 = vpop.permute.xlu0 %2576 }
0x2c5e   :  { %v2585_v23 = vpop.permute.xlu0 %2584 }
0x2d26   :  { %v2553_v12 = vpop.f32.mrb[30].mxu1 }
0x2d27   :  { %v2554_v0 = vadd.f32 %v4406_v50, %v2553_v12  ;;  %v3175_v25 = vpop.f32.mrb[31].mxu1 }
0x2d29   :  { %v2679_v13 = vmul.f32 -1.442695, %v2554_v0 }
0x2d2b   :  { %3520 = vpow2.f32 %v2679_v13 }
0x2d35   :  { %v3521_v26 = vpop.eup %3520 }
0x2d36   :  { %v2560_v17 = vadd.f32 1.0, %v3521_v26 }
0x2d38   :  { %3522 = vrcp.f32 %v2560_v17 }
0x2d39   :  { %3524 = vpow2.f32 %v2637_v29 }
0x2d42   :  { %v3523_v27 = vpop.eup %3522 }
0x2d43   :  { %2588 = vrot.lane.b32.xlu1 %v3523_v27, %s3809_s19  ;;  %v3525_v31 = vpop.eup %3524 }
0x2d44   :  { %v579_v32 = vadd.f32 1.0, %v3525_v31 }
0x2d46   :  { %3526 = vrcp.f32 %v579_v32 }
0x2d50   :  { %v3527_v35 = vpop.eup %3526 }
0x2d51   :  { %v2592_v36 = vsel %vm2591_vm3, %v3527_v35, %v2565_v33 }
0x2d52   :  { %v2594_v41 = vsel %vm2593_vm4, %v2592_v36, %v2569_v34 }
0x2d53   :  { %v2596_v42 = vsel %vm2595_vm5, %v2594_v41, %v2573_v24 }
0x2d54   :  { %v2598_v45 = vsel %vm2597_vm6, %v2596_v42, %v2577_v39 }
0x2d55   :  { %v2600_v46 = vsel %vm2599_vm7, %v2598_v45, %v2581_v44 }
0x2d56   :  { %v2602_v48 = vsel %vm2601_vm8, %v2600_v46, %v2585_v23 }
0x2db5   :  { %v2589_v50 = vpop.permute.xlu1 %2588 }
0x2db6   :  { %v2604_v51 = vsel %vm2603_vm9, %v2602_v48, %v2589_v50 }
0x2db7   :  { %2606 = vst.msk [vmem:[#allocation19] sm:$0x3] %vm2605_vm10, %v2604_v51 }
0x2db8   :  { %3760 = shalt.err (!%p3757_p0)
}
0x2db9   :  { %s3761_s16 = scalar_lea.hbm %s4450_s10, 32 }
0x2dba   :  { %p3762_p1 = scmp.ne.s32.totalorder %s4450_s10, %s3761_s16  ;;  %p3765_p2 = scmp.lt.u32.totalorder %s3761_s16, %s4450_s10 }
0x2dbc   :  { %p3767_p3 = pnand %p3765_p2, %p3762_p1 }
0x2dbe   :  { %3770 = shalt.err (!%p3767_p3)
}
0x2dbf   :  { %2616 = dma.vmem_to_hbm [thread:$0]  %s2614_s15, 32, %s4450_s10, [#allocation4]  }
0x2dc0   :  { %3783 = dma.done.wait [#allocation4], 32  }
0x2dc1   :  { %3784 = vsyncadd [#allocation4], 4294967264 }
0x2dc2   :  { %2620 = vsyncpa [#allocation3], 1 }
0x2dc3   :  { %2621 = vsyncpa [#allocation6], 1 }
0x2dc4   :  { %2622 = vsyncpa [#allocation9], 1 }
0x2dc5   :  { %2623 = vsyncpa [#allocation12], 1 }
0x2dc6   :  { %2624 = vsyncpa [#allocation15], 1 }
0x2dc7   :  { %2625 = vsyncpa [#allocation18], 1 }
0x2dc8   :  { %2626 = vsyncpa [#allocation4], 1 }

</bundles_post_ra>
